<compile_context>
chip_gen: v7x
topology: tpu7x:2x2x1
jax: 0.10.0
libtpu: 0.0.40
codegen_flags: <defaults>
</compile_context>

<pallas_src>
import jax
import jax.numpy as jnp
from jax.experimental import pallas as pl
from jax.experimental.pallas import tpu as pltpu


IN_DIM = 784          # 28 * 28
HID = 400
LATENT = 64
OUT_PAD = 896         # 784 padded up to 7 * 128 for unmasked (lane-dense) stores


def vae_kernel(x_ref, eps_ref,
               w1_ref, b1_ref,
               w2_ref, b2_ref,
               w3_ref, b3_ref,
               w4_ref, b4_ref,
               recon_ref, mulv_ref):
    """Full VAE forward for one batch tile.

    Matmuls: bf16 operands, f32 accumulation on the MXU.
    Elementwise (reparameterization, sigmoid): f32.
    """
    x = x_ref[...]                                                   # (tm, 784) bf16

    # encode: fc1 (no ReLU in the reference module's encode()).
    h1 = jnp.dot(x, w1_ref[...],
                 preferred_element_type=jnp.float32) + b1_ref[...]   # (tm, 400) f32

    # fc21 || fc22 fused into one 400 -> 128 matmul; lane-dense result slab.
    mulv = jnp.dot(h1.astype(jnp.bfloat16), w2_ref[...],
                   preferred_element_type=jnp.float32) + b2_ref[...] # (tm, 128) f32
    mu = mulv[:, :LATENT]
    logvar = mulv[:, LATENT:]

    # reparameterize: z = mu + eps * exp(0.5 * logvar)  (f32)
    z = mu + eps_ref[...] * jnp.exp(0.5 * logvar)                    # (tm, 64) f32

    # decode: fc3, fc4 (no ReLU in the reference module's decode()).
    h3 = jnp.dot(z.astype(jnp.bfloat16), w3_ref[...],
                 preferred_element_type=jnp.float32) + b3_ref[...]   # (tm, 400) f32
    logits = jnp.dot(h3.astype(jnp.bfloat16), w4_ref[...],
                     preferred_element_type=jnp.float32) + b4_ref[...]  # (tm, 896) f32

    recon_ref[...] = jax.nn.sigmoid(logits)
    mulv_ref[...] = mulv


def _round_up(x, m):
    return ((x + m - 1) // m) * m


def pack_params(params):
    """Fuse fc21/fc22, pad fc4 output to 896, cast weights to bf16."""
    (w1, b1, w21, b21, w22, b22, w3, b3, w4, b4) = params
    w2 = jnp.concatenate([w21, w22], axis=1)            # (400, 128)
    b2 = jnp.concatenate([b21, b22], axis=1)            # (1, 128)
    w4p = jnp.pad(w4, ((0, 0), (0, OUT_PAD - IN_DIM)))  # (400, 896)
    b4p = jnp.pad(b4, ((0, 0), (0, OUT_PAD - IN_DIM)))  # (1, 896)
    bf = jnp.bfloat16
    return (w1.astype(bf), b1, w2.astype(bf), b2,
            w3.astype(bf), b3, w4p.astype(bf), b4p)


def vae_linear_forward(x_nchw, packed_params, eps, *, tm=256):
    """x_nchw: (N, 1, 28, 28) f32, eps: (N, 64) f32. Returns (recon, mu, logvar)."""
    n = x_nchw.shape[0]
    (w1, b1, w2, b2, w3, b3, w4, b4) = packed_params

    # Batch tile: at most `tm` rows (256 fills the MXU and fits every chip's
    # scoped VMEM with double-buffered activations), at least the 8-sublane min.
    tm = min(tm, max(8, _round_up(n, 8)))
    n_pad = _round_up(n, tm)

    x = x_nchw.reshape(n, IN_DIM).astype(jnp.bfloat16)   # x.view(-1, 784), bf16
    eps_p = eps
    if n_pad != n:
        x = jnp.pad(x, ((0, n_pad - n), (0, 0)))
        eps_p = jnp.pad(eps, ((0, n_pad - n), (0, 0)))

    grid = (n_pad // tm,)

    recon_pad, mulv = pl.pallas_call(
        vae_kernel,
        out_shape=(
            jax.ShapeDtypeStruct((n_pad, OUT_PAD), jnp.float32),      # recon (padded)
            jax.ShapeDtypeStruct((n_pad, 2 * LATENT), jnp.float32),   # mu || logvar
        ),
        grid=grid,
        in_specs=[
            pl.BlockSpec((tm, IN_DIM), lambda i: (i, 0)),             # x tile
            pl.BlockSpec((tm, LATENT), lambda i: (i, 0)),             # eps tile
            pl.BlockSpec((IN_DIM, HID), lambda i: (0, 0)),            # w1 (resident)
            pl.BlockSpec((1, HID), lambda i: (0, 0)),                 # b1
            pl.BlockSpec((HID, 2 * LATENT), lambda i: (0, 0)),        # w21||w22
            pl.BlockSpec((1, 2 * LATENT), lambda i: (0, 0)),          # b21||b22
            pl.BlockSpec((LATENT, HID), lambda i: (0, 0)),            # w3
            pl.BlockSpec((1, HID), lambda i: (0, 0)),                 # b3
            pl.BlockSpec((HID, OUT_PAD), lambda i: (0, 0)),           # w4 (padded)
            pl.BlockSpec((1, OUT_PAD), lambda i: (0, 0)),             # b4 (padded)
        ],
        out_specs=(
            pl.BlockSpec((tm, OUT_PAD), lambda i: (i, 0)),
            pl.BlockSpec((tm, 2 * LATENT), lambda i: (i, 0)),
        ),
        compiler_params=pltpu.CompilerParams(
            dimension_semantics=("parallel",),          # megacore-shard batch axis
            vmem_limit_bytes=32 * 1024 * 1024,
        ),
    )(x, eps_p, w1, b1, w2, b2, w3, b3, w4, b4)

    recon = recon_pad[:n, :IN_DIM]
    mu = mulv[:n, :LATENT]
    logvar = mulv[:n, LATENT:]
    return recon, mu, logvar


def init_params(key):
    """Deterministic init matching PyTorch nn.Linear shapes ((in, out) layout)."""
    def linear(key, fan_in, fan_out):
        kw, kb = jax.random.split(key)
        bound = 1.0 / jnp.sqrt(fan_in)
        w = jax.random.uniform(kw, (fan_in, fan_out), jnp.float32, -bound, bound)
        b = jax.random.uniform(kb, (1, fan_out), jnp.float32, -bound, bound)
        return w, b

    k1, k21, k22, k3, k4 = jax.random.split(key, 5)
    w1, b1 = linear(k1, IN_DIM, HID)       # fc1
    w21, b21 = linear(k21, HID, LATENT)    # fc21
    w22, b22 = linear(k22, HID, LATENT)    # fc22
    w3, b3 = linear(k3, LATENT, HID)       # fc3
    w4, b4 = linear(k4, HID, IN_DIM)       # fc4
    return (w1, b1, w21, b21, w22, b22, w3, b3, w4, b4)


def reference_forward_f32(x_nchw, params, eps):
    (w1, b1, w21, b21, w22, b22, w3, b3, w4, b4) = params
    x = x_nchw.reshape(x_nchw.shape[0], IN_DIM)
    h1 = x @ w1 + b1
    mu = h1 @ w21 + b21
    logvar = h1 @ w22 + b22
    z = mu + eps * jnp.exp(0.5 * logvar)
    h3 = z @ w3 + b3
    recon = jax.nn.sigmoid(h3 @ w4 + b4)
    return recon, mu, logvar


def reference_forward_bf16(x_nchw, params, eps):
    """Pure-JAX reference mirroring the kernel's bf16-operand / f32-acc math."""
    (w1, b1, w21, b21, w22, b22, w3, b3, w4, b4) = params
    bf = jnp.bfloat16
    x = x_nchw.reshape(x_nchw.shape[0], IN_DIM).astype(bf)
    h1 = jnp.dot(x, w1.astype(bf), preferred_element_type=jnp.float32) + b1
    mu = jnp.dot(h1.astype(bf), w21.astype(bf), preferred_element_type=jnp.float32) + b21
    logvar = jnp.dot(h1.astype(bf), w22.astype(bf), preferred_element_type=jnp.float32) + b22
    z = mu + eps * jnp.exp(0.5 * logvar)
    h3 = jnp.dot(z.astype(bf), w3.astype(bf), preferred_element_type=jnp.float32) + b3
    logits = jnp.dot(h3.astype(bf), w4.astype(bf), preferred_element_type=jnp.float32) + b4
    return jax.nn.sigmoid(logits), mu, logvar


if __name__ == "__main__":
    key = jax.random.PRNGKey(0)
    k_params, k_x, k_eps = jax.random.split(key, 3)

    params = init_params(k_params)
    packed = pack_params(params)

    batch = 2
    x = jax.random.normal(k_x, (batch, 1, 28, 28), jnp.float32)   # NCHW input
    # eps corresponds to torch.randn_like(std); generated deterministically in
    # the JAX wrapper so the kernel is fully reproducible.
    eps = jax.random.normal(k_eps, (batch, LATENT), jnp.float32)

    recon, mu, logvar = vae_linear_forward(x, packed, eps)
    jax.block_until_ready((recon, mu, logvar))

    assert recon.shape == (batch, IN_DIM)
    assert mu.shape == (batch, LATENT) and logvar.shape == (batch, LATENT)

    # Tight check against a bf16-mirrored JAX reference (same operand precision).
    r_bf, mu_bf, lv_bf = reference_forward_bf16(x, params, eps)
    assert jnp.allclose(recon, r_bf, atol=2e-2), "recon mismatch vs bf16 ref"
    assert jnp.allclose(mu, mu_bf, atol=2e-2), "mu mismatch vs bf16 ref"
    assert jnp.allclose(logvar, lv_bf, atol=2e-2), "logvar mismatch vs bf16 ref"

    # Loose semantic sanity check against the full-f32 reference
    # (tolerance relaxed because matmul operands are bf16 in the kernel).
    r32, mu32, lv32 = reference_forward_f32(x, params, eps)
    assert jnp.allclose(recon, r32, atol=2e-1), "recon mismatch vs f32 ref"
    assert jnp.allclose(mu, mu32, atol=2e-1), "mu mismatch vs f32 ref"
    assert jnp.allclose(logvar, lv32, atol=2e-1), "logvar mismatch vs f32 ref"

    print("KERNEL_OK")
</pallas_src>

<mosaic_0001>
module attributes {stable_mosaic.version = 11 : i64} {
  func.func @vae_kernel(%arg0: i32, %arg1: memref<8x784xbf16, #tpu.memory_space<vmem>>, %arg2: memref<8x64xf32, #tpu.memory_space<vmem>>, %arg3: memref<784x400xbf16, #tpu.memory_space<vmem>>, %arg4: memref<1x400xf32, #tpu.memory_space<vmem>>, %arg5: memref<400x128xbf16, #tpu.memory_space<vmem>>, %arg6: memref<1x128xf32, #tpu.memory_space<vmem>>, %arg7: memref<64x400xbf16, #tpu.memory_space<vmem>>, %arg8: memref<1x400xf32, #tpu.memory_space<vmem>>, %arg9: memref<400x896xbf16, #tpu.memory_space<vmem>>, %arg10: memref<1x896xf32, #tpu.memory_space<vmem>>, %arg11: memref<8x896xf32, #tpu.memory_space<vmem>>, %arg12: memref<8x128xf32, #tpu.memory_space<vmem>>) attributes {dimension_semantics = [#tpu.dimension_semantics<parallel>], iteration_bounds = array<i64: 1>, scalar_prefetch = 0 : i64, scratch_operands = 0 : i64, tpu.core_type = #tpu.core_type<tc>, window_params = [{transform_indices = @transform_0, window_bounds = array<i64: 8, 784>}, {transform_indices = @transform_1, window_bounds = array<i64: 8, 64>}, {pipeline_mode = #tpu.pipeline_mode<synchronous>, transform_indices = @transform_2, window_bounds = array<i64: 784, 400>}, {pipeline_mode = #tpu.pipeline_mode<synchronous>, transform_indices = @transform_3, window_bounds = array<i64: 1, 400>}, {pipeline_mode = #tpu.pipeline_mode<synchronous>, transform_indices = @transform_4, window_bounds = array<i64: 400, 128>}, {pipeline_mode = #tpu.pipeline_mode<synchronous>, transform_indices = @transform_5, window_bounds = array<i64: 1, 128>}, {pipeline_mode = #tpu.pipeline_mode<synchronous>, transform_indices = @transform_6, window_bounds = array<i64: 64, 400>}, {pipeline_mode = #tpu.pipeline_mode<synchronous>, transform_indices = @transform_7, window_bounds = array<i64: 1, 400>}, {pipeline_mode = #tpu.pipeline_mode<synchronous>, transform_indices = @transform_8, window_bounds = array<i64: 400, 896>}, {pipeline_mode = #tpu.pipeline_mode<synchronous>, transform_indices = @transform_9, window_bounds = array<i64: 1, 896>}, {transform_indices = @transform_10, window_bounds = array<i64: 8, 896>}, {transform_indices = @transform_11, window_bounds = array<i64: 8, 128>}]} {
    %c0 = arith.constant 0 : index
    %c0_0 = arith.constant 0 : index
    %0 = vector.load %arg1[%c0, %c0_0] : memref<8x784xbf16, #tpu.memory_space<vmem>>, vector<8x784xbf16>
    %c0_1 = arith.constant 0 : index
    %c0_2 = arith.constant 0 : index
    %1 = vector.load %arg3[%c0_1, %c0_2] : memref<784x400xbf16, #tpu.memory_space<vmem>>, vector<784x400xbf16>
    %cst = arith.constant dense<0.000000e+00> : vector<8x400xf32>
    %2 = tpu.matmul %0, %1, %cst {dimension_numbers = #tpu.dot_dimension_numbers<[1], [0], [0], [1], [0, 0, 1, 1], [], []>} : vector<8x784xbf16>, vector<784x400xbf16>, vector<8x400xf32> -> vector<8x400xf32>
    %c0_3 = arith.constant 0 : index
    %c0_4 = arith.constant 0 : index
    %3 = vector.load %arg4[%c0_3, %c0_4] : memref<1x400xf32, #tpu.memory_space<vmem>>, vector<1x400xf32>
    %4 = vector.broadcast %3 : vector<1x400xf32> to vector<8x400xf32>
    %5 = arith.addf %2, %4 : vector<8x400xf32>
    %6 = arith.truncf %5 : vector<8x400xf32> to vector<8x400xbf16>
    %c0_5 = arith.constant 0 : index
    %c0_6 = arith.constant 0 : index
    %7 = vector.load %arg5[%c0_5, %c0_6] : memref<400x128xbf16, #tpu.memory_space<vmem>>, vector<400x128xbf16>
    %cst_7 = arith.constant dense<0.000000e+00> : vector<8x128xf32>
    %8 = tpu.matmul %6, %7, %cst_7 {dimension_numbers = #tpu.dot_dimension_numbers<[1], [0], [0], [1], [0, 0, 1, 1], [], []>} : vector<8x400xbf16>, vector<400x128xbf16>, vector<8x128xf32> -> vector<8x128xf32>
    %c0_8 = arith.constant 0 : index
    %c0_9 = arith.constant 0 : index
    %9 = vector.load %arg6[%c0_8, %c0_9] : memref<1x128xf32, #tpu.memory_space<vmem>>, vector<1x128xf32>
    %10 = vector.broadcast %9 : vector<1x128xf32> to vector<8x128xf32>
    %11 = arith.addf %8, %10 : vector<8x128xf32>
    %12 = vector.extract_strided_slice %11 {offsets = [0, 0], sizes = [8, 64], strides = [1, 1]} : vector<8x128xf32> to vector<8x64xf32>
    %13 = vector.extract_strided_slice %11 {offsets = [0, 64], sizes = [8, 64], strides = [1, 1]} : vector<8x128xf32> to vector<8x64xf32>
    %c0_10 = arith.constant 0 : index
    %c0_11 = arith.constant 0 : index
    %14 = vector.load %arg2[%c0_10, %c0_11] : memref<8x64xf32, #tpu.memory_space<vmem>>, vector<8x64xf32>
    %cst_12 = arith.constant 5.000000e-01 : f32
    %15 = vector.broadcast %cst_12 : f32 to vector<8x64xf32>
    %16 = arith.mulf %15, %13 : vector<8x64xf32>
    %17 = math.exp %16 : vector<8x64xf32>
    %18 = arith.mulf %14, %17 : vector<8x64xf32>
    %19 = arith.addf %12, %18 : vector<8x64xf32>
    %20 = arith.truncf %19 : vector<8x64xf32> to vector<8x64xbf16>
    %c0_13 = arith.constant 0 : index
    %c0_14 = arith.constant 0 : index
    %21 = vector.load %arg7[%c0_13, %c0_14] : memref<64x400xbf16, #tpu.memory_space<vmem>>, vector<64x400xbf16>
    %cst_15 = arith.constant dense<0.000000e+00> : vector<8x400xf32>
    %22 = tpu.matmul %20, %21, %cst_15 {dimension_numbers = #tpu.dot_dimension_numbers<[1], [0], [0], [1], [0, 0, 1, 1], [], []>} : vector<8x64xbf16>, vector<64x400xbf16>, vector<8x400xf32> -> vector<8x400xf32>
    %c0_16 = arith.constant 0 : index
    %c0_17 = arith.constant 0 : index
    %23 = vector.load %arg8[%c0_16, %c0_17] : memref<1x400xf32, #tpu.memory_space<vmem>>, vector<1x400xf32>
    %24 = vector.broadcast %23 : vector<1x400xf32> to vector<8x400xf32>
    %25 = arith.addf %22, %24 : vector<8x400xf32>
    %26 = arith.truncf %25 : vector<8x400xf32> to vector<8x400xbf16>
    %c0_18 = arith.constant 0 : index
    %c0_19 = arith.constant 0 : index
    %27 = vector.load %arg9[%c0_18, %c0_19] : memref<400x896xbf16, #tpu.memory_space<vmem>>, vector<400x896xbf16>
    %cst_20 = arith.constant dense<0.000000e+00> : vector<8x896xf32>
    %28 = tpu.matmul %26, %27, %cst_20 {dimension_numbers = #tpu.dot_dimension_numbers<[1], [0], [0], [1], [0, 0, 1, 1], [], []>} : vector<8x400xbf16>, vector<400x896xbf16>, vector<8x896xf32> -> vector<8x896xf32>
    %c0_21 = arith.constant 0 : index
    %c0_22 = arith.constant 0 : index
    %29 = vector.load %arg10[%c0_21, %c0_22] : memref<1x896xf32, #tpu.memory_space<vmem>>, vector<1x896xf32>
    %30 = vector.broadcast %29 : vector<1x896xf32> to vector<8x896xf32>
    %31 = arith.addf %28, %30 : vector<8x896xf32>
    %32 = arith.negf %31 : vector<8x896xf32>
    %33 = math.exp %32 : vector<8x896xf32>
    %cst_23 = arith.constant 1.000000e+00 : f32
    %34 = vector.broadcast %cst_23 : f32 to vector<8x896xf32>
    %35 = arith.addf %34, %33 : vector<8x896xf32>
    %36 = arith.divf %34, %35 : vector<8x896xf32>
    %c0_24 = arith.constant 0 : index
    %c0_25 = arith.constant 0 : index
    %37 = vector.load %arg11[%c0_24, %c0_25] : memref<8x896xf32, #tpu.memory_space<vmem>>, vector<8x896xf32>
    tpu.vector_store %arg11[%c0_24, %c0_25], %36 {strides = array<i32>} : memref<8x896xf32, #tpu.memory_space<vmem>>, vector<8x896xf32>,
    %c0_26 = arith.constant 0 : index
    %c0_27 = arith.constant 0 : index
    %38 = vector.load %arg12[%c0_26, %c0_27] : memref<8x128xf32, #tpu.memory_space<vmem>>, vector<8x128xf32>
    tpu.vector_store %arg12[%c0_26, %c0_27], %11 {strides = array<i32>} : memref<8x128xf32, #tpu.memory_space<vmem>>, vector<8x128xf32>,
    return
  }
  func.func @transform_0(%arg0: i32) -> (i32, i32) {
    %c0_i32 = arith.constant 0 : i32
    %c0_i32_0 = arith.constant 0 : i32
    return %arg0, %c0_i32 : i32, i32
  }
  func.func @transform_1(%arg0: i32) -> (i32, i32) {
    %c0_i32 = arith.constant 0 : i32
    %c0_i32_0 = arith.constant 0 : i32
    return %arg0, %c0_i32 : i32, i32
  }
  func.func @transform_2(%arg0: i32) -> (i32, i32) {
    %c0_i32 = arith.constant 0 : i32
    %c0_i32_0 = arith.constant 0 : i32
    %c0_i32_1 = arith.constant 0 : i32
    return %c0_i32, %c0_i32_0 : i32, i32
  }
  func.func @transform_3(%arg0: i32) -> (i32, i32) {
    %c0_i32 = arith.constant 0 : i32
    %c0_i32_0 = arith.constant 0 : i32
    %c0_i32_1 = arith.constant 0 : i32
    return %c0_i32, %c0_i32_0 : i32, i32
  }
  func.func @transform_4(%arg0: i32) -> (i32, i32) {
    %c0_i32 = arith.constant 0 : i32
    %c0_i32_0 = arith.constant 0 : i32
    %c0_i32_1 = arith.constant 0 : i32
    return %c0_i32, %c0_i32_0 : i32, i32
  }
  func.func @transform_5(%arg0: i32) -> (i32, i32) {
    %c0_i32 = arith.constant 0 : i32
    %c0_i32_0 = arith.constant 0 : i32
    %c0_i32_1 = arith.constant 0 : i32
    return %c0_i32, %c0_i32_0 : i32, i32
  }
  func.func @transform_6(%arg0: i32) -> (i32, i32) {
    %c0_i32 = arith.constant 0 : i32
    %c0_i32_0 = arith.constant 0 : i32
    %c0_i32_1 = arith.constant 0 : i32
    return %c0_i32, %c0_i32_0 : i32, i32
  }
  func.func @transform_7(%arg0: i32) -> (i32, i32) {
    %c0_i32 = arith.constant 0 : i32
    %c0_i32_0 = arith.constant 0 : i32
    %c0_i32_1 = arith.constant 0 : i32
    return %c0_i32, %c0_i32_0 : i32, i32
  }
  func.func @transform_8(%arg0: i32) -> (i32, i32) {
    %c0_i32 = arith.constant 0 : i32
    %c0_i32_0 = arith.constant 0 : i32
    %c0_i32_1 = arith.constant 0 : i32
    return %c0_i32, %c0_i32_0 : i32, i32
  }
  func.func @transform_9(%arg0: i32) -> (i32, i32) {
    %c0_i32 = arith.constant 0 : i32
    %c0_i32_0 = arith.constant 0 : i32
    %c0_i32_1 = arith.constant 0 : i32
    return %c0_i32, %c0_i32_0 : i32, i32
  }
  func.func @transform_10(%arg0: i32) -> (i32, i32) {
    %c0_i32 = arith.constant 0 : i32
    %c0_i32_0 = arith.constant 0 : i32
    return %arg0, %c0_i32 : i32, i32
  }
  func.func @transform_11(%arg0: i32) -> (i32, i32) {
    %c0_i32 = arith.constant 0 : i32
    %c0_i32_0 = arith.constant 0 : i32
    return %arg0, %c0_i32 : i32, i32
  }
}

</mosaic_0001>

<bundles_post_ra>
// kernel: tpu_custom_call.1
= control target key start
LH: loop header
LB: loop body
LE: loop exit
PB: predicated region body
PF: predicated region fallthrough
CT: control target
= control target key end

     0   :  { %17 = vsyncpa [#allocation3], 0  ;;  %vm1266_vm0 = vcmask 130048   ;;  %s6330_s0 = inlined_call_operand.vmem [shape: bf16[8,784], index: 0, kind: input, shape index: {}]   ;;  %s6331_s1 = inlined_call_operand.vmem [shape: f32[8,64], index: 1, kind: input, shape index: {}]   ;;  %s6332_s2 = inlined_call_operand.vmem [shape: bf16[784,400], index: 2, kind: input, shape index: {}]   ;;  %s6333_s3 = inlined_call_operand.vmem [shape: f32[1,400], index: 3, kind: input, shape index: {}]   ;;  %s6334_s4 = inlined_call_operand.vmem [shape: bf16[400,128], index: 4, kind: input, shape index: {}]   ;;  %s6335_s5 = inlined_call_operand.vmem [shape: f32[1,128], index: 5, kind: input, shape index: {}]   ;;  %s6336_s6 = inlined_call_operand.vmem [shape: bf16[64,400], index: 6, kind: input, shape index: {}]   ;;  %s6337_s7 = inlined_call_operand.vmem [shape: f32[1,400], index: 7, kind: input, shape index: {}]   ;;  %s6338_s8 = inlined_call_operand.vmem [shape: bf16[400,896], index: 8, kind: input, shape index: {}]   ;;  %s6339_s9 = inlined_call_operand.vmem [shape: f32[1,896], index: 9, kind: input, shape index: {}]   ;;  %s6340_s10 = inlined_call_operand.hbm [shape: f32[8,896], index: 10, kind: output, shape index: {0}]   ;;  %s6341_s11 = inlined_call_operand.hbm [shape: f32[8,128], index: 11, kind: output, shape index: {1}]  }
   0x1   :  { %v4185_v0 = vld [vmem:[%s6332_s2 + $0x4] ss:$16 sps:$4 sm:$0xff]   ;;  %v4187_v1 = vld [vmem:[%s6332_s2 + $0xc] ss:$16 sps:$4 sm:$0xff]   ;;  %v4189_v2 = vld [vmem:[%s6332_s2] ss:$16 sps:$4 sm:$0xff]  }
   0x2   :  { %1270 = vmatprep.subr.bf16.mxu0 %v4185_v0  ;;  %v4190_v3 = vld [vmem:[%s6332_s2 + $0x8] ss:$16 sps:$4 sm:$0xff]   ;;  %1434 = vmatprep.subr.bf16.mxu1 %v4187_v1  ;;  %v4191_v4 = vld [vmem:[%s6332_s2 + $0x24] ss:$16 sps:$4 sm:$0xff]   ;;  %v4193_v5 = vld [vmem:[%s6332_s2 + $0x2c] ss:$16 sps:$4 sm:$0xff]  }
   0x3   :  { %1271 = vmatpush1.bf16.msra.mxu0 %v4189_v2  ;;  %1435 = vmatpush1.bf16.msra.mxu1 %v4190_v3  ;;  %v4195_v6 = vld [vmem:[%s6332_s2 + $0x20] ss:$16 sps:$4 sm:$0xff]   ;;  %v4196_v7 = vld [vmem:[%s6332_s2 + $0x28] ss:$16 sps:$4 sm:$0xff]   ;;  %v4197_v8 = vld [vmem:[%s6332_s2 + $0x44] ss:$16 sps:$4 sm:$0xff]  }
   0x4   :  { %1272 = vmatprep.subr.bf16.mxu0 %v4191_v4  ;;  %1436 = vmatprep.subr.bf16.mxu1 %v4193_v5  ;;  %v4199_v9 = vld [vmem:[%s6332_s2 + $0x4c] ss:$16 sps:$4 sm:$0xff]   ;;  %v4201_v10 = vld [vmem:[%s6332_s2 + $0x40] ss:$16 sps:$4 sm:$0xff]   ;;  %v4202_v11 = vld [vmem:[%s6332_s2 + $0x48] ss:$16 sps:$4 sm:$0xff]  }
   0x5   :  { %v4203_v12 = vld [vmem:[%s6332_s2 + $0x64] ss:$16 sps:$4 sm:$0xff]   ;;  %v4205_v13 = vld [vmem:[%s6332_s2 + $0x6c] ss:$16 sps:$4 sm:$0xff]   ;;  %v4207_v14 = vld [vmem:[%s6332_s2 + $0x60] ss:$16 sps:$4 sm:$0xff]  }
   0x6   :  { %v4208_v15 = vld [vmem:[%s6332_s2 + $0x68] ss:$16 sps:$4 sm:$0xff]   ;;  %v4209_v16 = vld [vmem:[%s6332_s2 + $0x84] ss:$16 sps:$4 sm:$0xff]   ;;  %v4211_v17 = vld [vmem:[%s6332_s2 + $0x8c] ss:$16 sps:$4 sm:$0xff]  }
   0x7   :  { %1273 = vmatpush1.bf16.msra.mxu0 %v4195_v6  ;;  %1437 = vmatpush1.bf16.msra.mxu1 %v4196_v7  ;;  %v4213_v18 = vld [vmem:[%s6332_s2 + $0x80] ss:$16 sps:$4 sm:$0xff]   ;;  %v4214_v19 = vld [vmem:[%s6332_s2 + $0x88] ss:$16 sps:$4 sm:$0xff]   ;;  %v4215_v20 = vld [vmem:[%s6332_s2 + $0xa4] ss:$16 sps:$4 sm:$0xff]  }
   0x8   :  { %1274 = vmatprep.subr.bf16.mxu0 %v4197_v8  ;;  %1438 = vmatprep.subr.bf16.mxu1 %v4199_v9  ;;  %v4217_v21 = vld [vmem:[%s6332_s2 + $0xac] ss:$16 sps:$4 sm:$0xff]   ;;  %v4219_v22 = vld [vmem:[%s6332_s2 + $0xa0] ss:$16 sps:$4 sm:$0xff]   ;;  %v4220_v23 = vld [vmem:[%s6332_s2 + $0xa8] ss:$16 sps:$4 sm:$0xff]  }
   0x9   :  { %v4221_v24 = vld [vmem:[%s6332_s2 + $0xc4] ss:$16 sps:$4 sm:$0xff]   ;;  %v4223_v25 = vld [vmem:[%s6332_s2 + $0xcc] ss:$16 sps:$4 sm:$0xff]   ;;  %v4225_v26 = vld [vmem:[%s6332_s2 + $0xc0] ss:$16 sps:$4 sm:$0xff]  }
   0xa   :  { %v4226_v27 = vld [vmem:[%s6332_s2 + $0xc8] ss:$16 sps:$4 sm:$0xff]   ;;  %v4227_v28 = vld [vmem:[%s6332_s2 + $0xe4] ss:$16 sps:$4 sm:$0xff]   ;;  %v4229_v29 = vld [vmem:[%s6332_s2 + $0xec] ss:$16 sps:$4 sm:$0xff]  }
   0xb   :  { %1275 = vmatpush1.bf16.msra.mxu0 %v4201_v10  ;;  %1439 = vmatpush1.bf16.msra.mxu1 %v4202_v11  ;;  %v4231_v30 = vld [vmem:[%s6332_s2 + $0xe0] ss:$16 sps:$4 sm:$0xff]   ;;  %v4232_v31 = vld [vmem:[%s6332_s2 + $0xe8] ss:$16 sps:$4 sm:$0xff]   ;;  %v4233_v32 = vld [vmem:[%s6332_s2 + $0x104] ss:$16 sps:$4 sm:$0xff]  }
   0xc   :  { %1276 = vmatprep.subr.bf16.mxu0 %v4203_v12  ;;  %1440 = vmatprep.subr.bf16.mxu1 %v4205_v13  ;;  %v4235_v33 = vld [vmem:[%s6332_s2 + $0x10c] ss:$16 sps:$4 sm:$0xff]   ;;  %v4237_v34 = vld [vmem:[%s6332_s2 + $0x100] ss:$16 sps:$4 sm:$0xff]   ;;  %v4238_v35 = vld [vmem:[%s6332_s2 + $0x108] ss:$16 sps:$4 sm:$0xff]  }
   0xd   :  { %v4239_v36 = vld [vmem:[%s6332_s2 + $0x124] ss:$16 sps:$4 sm:$0xff]   ;;  %v4241_v37 = vld [vmem:[%s6332_s2 + $0x12c] ss:$16 sps:$4 sm:$0xff]   ;;  %v4243_v38 = vld [vmem:[%s6332_s2 + $0x120] ss:$16 sps:$4 sm:$0xff]  }
   0xe   :  { %v4244_v39 = vld [vmem:[%s6332_s2 + $0x128] ss:$16 sps:$4 sm:$0xff]   ;;  %v4245_v40 = vld [vmem:[%s6332_s2 + $0x144] ss:$16 sps:$4 sm:$0xff]   ;;  %v4247_v41 = vld [vmem:[%s6332_s2 + $0x14c] ss:$16 sps:$4 sm:$0xff]  }
   0xf   :  { %1277 = vmatpush1.bf16.msra.mxu0 %v4207_v14  ;;  %1441 = vmatpush1.bf16.msra.mxu1 %v4208_v15  ;;  %v4249_v42 = vld [vmem:[%s6332_s2 + $0x140] ss:$16 sps:$4 sm:$0xff]   ;;  %v4250_v43 = vld [vmem:[%s6332_s2 + $0x148] ss:$16 sps:$4 sm:$0xff]   ;;  %v4251_v44 = vld [vmem:[%s6332_s2 + $0x164] ss:$16 sps:$4 sm:$0xff]  }
  0x10   :  { %1278 = vmatprep.subr.bf16.mxu0 %v4209_v16  ;;  %1442 = vmatprep.subr.bf16.mxu1 %v4211_v17  ;;  %v4253_v45 = vld [vmem:[%s6332_s2 + $0x16c] ss:$16 sps:$4 sm:$0xff]   ;;  %v40_v46 = vld [vmem:[%s6330_s0] sm:$0xff]  ;;  %v4256_v49 = vld [vmem:[%s6332_s2 + $0x168] ss:$16 sps:$4 sm:$0xff]  }
  0x11   :  { %v4255_v47 = vld [vmem:[%s6332_s2 + $0x160] ss:$16 sps:$4 sm:$0xff]   ;;  %v3656_v48 = vcombine.high %v40_v46, %v40_v46  ;;  %v4257_v50 = vld [vmem:[%s6332_s2 + $0x184] ss:$16 sps:$4 sm:$0xff]   ;;  %v4259_v51 = vld [vmem:[%s6332_s2 + $0x18c] ss:$16 sps:$4 sm:$0xff]   ;;  %v3655_v4 = vcombine.low %v40_v46, %v40_v46 }
  0x12   :  { %v4261_v52 = vld [vmem:[%s6332_s2 + $0x180] ss:$16 sps:$4 sm:$0xff]   ;;  %v4262_v53 = vld [vmem:[%s6332_s2 + $0x188] ss:$16 sps:$4 sm:$0xff]   ;;  %v4263_v54 = vld [vmem:[%s6332_s2 + $0x1a4] ss:$16 sps:$4 sm:$0xff]  }
  0x13   :  { %1279 = vmatpush1.bf16.msra.mxu0 %v4213_v18  ;;  %1443 = vmatpush1.bf16.msra.mxu1 %v4214_v19  ;;  %v4265_v55 = vld [vmem:[%s6332_s2 + $0x1ac] ss:$16 sps:$4 sm:$0xff]   ;;  %v4267_v56 = vld [vmem:[%s6332_s2 + $0x1a0] ss:$16 sps:$4 sm:$0xff]   ;;  %v4268_v57 = vld [vmem:[%s6332_s2 + $0x1a8] ss:$16 sps:$4 sm:$0xff]  }
  0x14   :  { %1280 = vmatprep.subr.bf16.mxu0 %v4215_v20  ;;  %1444 = vmatprep.subr.bf16.mxu1 %v4217_v21  ;;  %v4269_v58 = vld [vmem:[%s6332_s2 + $0x1c4] ss:$16 sps:$4 sm:$0xff]   ;;  %v4271_v59 = vld [vmem:[%s6332_s2 + $0x1cc] ss:$16 sps:$4 sm:$0xff]   ;;  %v4273_v60 = vld [vmem:[%s6332_s2 + $0x1c0] ss:$16 sps:$4 sm:$0xff]  }
  0x15   :  { %1302 = vmatprep.mubr.bf16.mxu0 %v3656_v48  ;;  %1466 = vmatprep.mubr.bf16.mxu1 %v3656_v48  ;;  %v4274_v61 = vld [vmem:[%s6332_s2 + $0x1c8] ss:$16 sps:$4 sm:$0xff]   ;;  %v4275_v62 = vld [vmem:[%s6332_s2 + $0x1e4] ss:$16 sps:$4 sm:$0xff]   ;;  %v4277_v63 = vld [vmem:[%s6332_s2 + $0x1ec] ss:$16 sps:$4 sm:$0xff]  }
  0x16   :  { %v4279_v0 = vld [vmem:[%s6332_s2 + $0x1e0] ss:$16 sps:$4 sm:$0xff]   ;;  %v4280_v1 = vld [vmem:[%s6332_s2 + $0x1e8] ss:$16 sps:$4 sm:$0xff]   ;;  %v4285_v2 = vld [vmem:[%s6332_s2 + $0x204] ss:$16 sps:$4 sm:$0xff]  }
  0x17   :  { %1281 = vmatpush1.bf16.msra.mxu0 %v4219_v22  ;;  %1445 = vmatpush1.bf16.msra.mxu1 %v4220_v23  ;;  %v4288_v3 = vld [vmem:[%s6332_s2 + $0x20c] ss:$16 sps:$4 sm:$0xff]   ;;  %v4283_v5 = vld [vmem:[%s6332_s2 + $0x200] ss:$16 sps:$4 sm:$0xff]   ;;  %v4286_v6 = vld [vmem:[%s6332_s2 + $0x208] ss:$16 sps:$4 sm:$0xff]  }
  0x18   :  { %1282 = vmatprep.subr.bf16.mxu0 %v4221_v24  ;;  %1446 = vmatprep.subr.bf16.mxu1 %v4223_v25  ;;  %v4291_v7 = vld [vmem:[%s6332_s2 + $0x224] ss:$16 sps:$4 sm:$0xff]   ;;  %v4294_v8 = vld [vmem:[%s6332_s2 + $0x22c] ss:$16 sps:$4 sm:$0xff]   ;;  %v4289_v9 = vld [vmem:[%s6332_s2 + $0x220] ss:$16 sps:$4 sm:$0xff]  }
  0x19   :  { %v4292_v10 = vld [vmem:[%s6332_s2 + $0x228] ss:$16 sps:$4 sm:$0xff]   ;;  %v4297_v11 = vld [vmem:[%s6332_s2 + $0x244] ss:$16 sps:$4 sm:$0xff]   ;;  %v4300_v12 = vld [vmem:[%s6332_s2 + $0x24c] ss:$16 sps:$4 sm:$0xff]  }
  0x1a   :  { %v4295_v13 = vld [vmem:[%s6332_s2 + $0x240] ss:$16 sps:$4 sm:$0xff]   ;;  %v4298_v14 = vld [vmem:[%s6332_s2 + $0x248] ss:$16 sps:$4 sm:$0xff]   ;;  %v4303_v15 = vld [vmem:[%s6332_s2 + $0x264] ss:$16 sps:$4 sm:$0xff]  }
  0x1b   :  { %1283 = vmatpush1.bf16.msra.mxu0 %v4225_v26  ;;  %1447 = vmatpush1.bf16.msra.mxu1 %v4226_v27  ;;  %v4306_v16 = vld [vmem:[%s6332_s2 + $0x26c] ss:$16 sps:$4 sm:$0xff]   ;;  %v4301_v17 = vld [vmem:[%s6332_s2 + $0x260] ss:$16 sps:$4 sm:$0xff]   ;;  %v4304_v18 = vld [vmem:[%s6332_s2 + $0x268] ss:$16 sps:$4 sm:$0xff]  }
  0x1c   :  { %1284 = vmatprep.subr.bf16.mxu0 %v4227_v28  ;;  %1448 = vmatprep.subr.bf16.mxu1 %v4229_v29  ;;  %v4309_v19 = vld [vmem:[%s6332_s2 + $0x284] ss:$16 sps:$4 sm:$0xff]   ;;  %v4312_v20 = vld [vmem:[%s6332_s2 + $0x28c] ss:$16 sps:$4 sm:$0xff]   ;;  %v4307_v21 = vld [vmem:[%s6332_s2 + $0x280] ss:$16 sps:$4 sm:$0xff]  }
  0x1d   :  { %v4310_v22 = vld [vmem:[%s6332_s2 + $0x288] ss:$16 sps:$4 sm:$0xff]   ;;  %v4315_v23 = vld [vmem:[%s6332_s2 + $0x2a4] ss:$16 sps:$4 sm:$0xff]   ;;  %v4318_v24 = vld [vmem:[%s6332_s2 + $0x2ac] ss:$16 sps:$4 sm:$0xff]  }
  0x1e   :  { %v4313_v25 = vld [vmem:[%s6332_s2 + $0x2a0] ss:$16 sps:$4 sm:$0xff]   ;;  %v4316_v26 = vld [vmem:[%s6332_s2 + $0x2a8] ss:$16 sps:$4 sm:$0xff]   ;;  %v4321_v27 = vld [vmem:[%s6332_s2 + $0x2c4] ss:$16 sps:$4 sm:$0xff]  }
  0x1f   :  { %1285 = vmatpush1.bf16.msra.mxu0 %v4231_v30  ;;  %1449 = vmatpush1.bf16.msra.mxu1 %v4232_v31  ;;  %v4324_v28 = vld [vmem:[%s6332_s2 + $0x2cc] ss:$16 sps:$4 sm:$0xff]   ;;  %v4319_v31 = vld [vmem:[%s6332_s2 + $0x2c0] ss:$16 sps:$4 sm:$0xff]   ;;  %v4346_v48 = vld [vmem:[%s6332_s2 + $0x348] ss:$16 sps:$4 sm:$0xff]  }
  0x20   :  { %1286 = vmatprep.subr.bf16.mxu0 %v4233_v32  ;;  %1450 = vmatprep.subr.bf16.mxu1 %v4235_v33  ;;  %v5203_v29 = vld [vmem:[%s6330_s0 + $0x8] sm:$0xff]  ;;  %v4327_v33 = vld [vmem:[%s6332_s2 + $0x2e4] ss:$16 sps:$4 sm:$0xff]  }
  0x21   :  { %v3658_v30 = vcombine.high %v5203_v29, %v5203_v29  ;;  %v4322_v32 = vld [vmem:[%s6332_s2 + $0x2c8] ss:$16 sps:$4 sm:$0xff]   ;;  %v4348_v46 = vld [vmem:[%s6332_s2 + $0x34c] ss:$16 sps:$4 sm:$0xff]  }
  0x23   :  { %1287 = vmatpush1.bf16.msra.mxu0 %v4237_v34  ;;  %1451 = vmatpush1.bf16.msra.mxu1 %v4238_v35  ;;  %v4330_v34 = vld [vmem:[%s6332_s2 + $0x2ec] ss:$16 sps:$4 sm:$0xff]   ;;  %v4325_v35 = vld [vmem:[%s6332_s2 + $0x2e0] ss:$16 sps:$4 sm:$0xff]  }
  0x24   :  { %1288 = vmatprep.subr.bf16.mxu0 %v4239_v36  ;;  %1452 = vmatprep.subr.bf16.mxu1 %v4241_v37  ;;  %v4328_v36 = vld [vmem:[%s6332_s2 + $0x2e8] ss:$16 sps:$4 sm:$0xff]   ;;  %v4333_v37 = vld [vmem:[%s6332_s2 + $0x304] ss:$16 sps:$4 sm:$0xff]  }
  0x27   :  { %1289 = vmatpush1.bf16.msra.mxu0 %v4243_v38  ;;  %1453 = vmatpush1.bf16.msra.mxu1 %v4244_v39  ;;  %v4336_v38 = vld [vmem:[%s6332_s2 + $0x30c] ss:$16 sps:$4 sm:$0xff]   ;;  %v4331_v39 = vld [vmem:[%s6332_s2 + $0x300] ss:$16 sps:$4 sm:$0xff]  }
  0x28   :  { %1290 = vmatprep.subr.bf16.mxu0 %v4245_v40  ;;  %1454 = vmatprep.subr.bf16.mxu1 %v4247_v41  ;;  %v4334_v40 = vld [vmem:[%s6332_s2 + $0x308] ss:$16 sps:$4 sm:$0xff]   ;;  %v4339_v41 = vld [vmem:[%s6332_s2 + $0x324] ss:$16 sps:$4 sm:$0xff]  }
  0x2b   :  { %1291 = vmatpush1.bf16.msra.mxu0 %v4249_v42  ;;  %1455 = vmatpush1.bf16.msra.mxu1 %v4250_v43  ;;  %v4342_v42 = vld [vmem:[%s6332_s2 + $0x32c] ss:$16 sps:$4 sm:$0xff]   ;;  %v4337_v43 = vld [vmem:[%s6332_s2 + $0x320] ss:$16 sps:$4 sm:$0xff]  }
  0x2c   :  { %1292 = vmatprep.subr.bf16.mxu0 %v4251_v44  ;;  %1456 = vmatprep.subr.bf16.mxu1 %v4253_v45  ;;  %v4340_v44 = vld [vmem:[%s6332_s2 + $0x328] ss:$16 sps:$4 sm:$0xff]   ;;  %v4345_v45 = vld [vmem:[%s6332_s2 + $0x344] ss:$16 sps:$4 sm:$0xff]  }
  0x2f   :  { %1293 = vmatpush1.bf16.msra.mxu0 %v4255_v47  ;;  %1457 = vmatpush1.bf16.msra.mxu1 %v4256_v49  ;;  %v4343_v47 = vld [vmem:[%s6332_s2 + $0x340] ss:$16 sps:$4 sm:$0xff]   ;;  %v4351_v49 = vld [vmem:[%s6332_s2 + $0x364] ss:$16 sps:$4 sm:$0xff]  }
  0x30   :  { %1294 = vmatprep.subr.bf16.mxu0 %v4257_v50  ;;  %1458 = vmatprep.subr.bf16.mxu1 %v4259_v51  ;;  %v4354_v50 = vld [vmem:[%s6332_s2 + $0x36c] ss:$16 sps:$4 sm:$0xff]   ;;  %v4349_v51 = vld [vmem:[%s6332_s2 + $0x360] ss:$16 sps:$4 sm:$0xff]  }
  0x33   :  { %1295 = vmatpush1.bf16.msra.mxu0 %v4261_v52  ;;  %1459 = vmatpush1.bf16.msra.mxu1 %v4262_v53  ;;  %v4352_v52 = vld [vmem:[%s6332_s2 + $0x368] ss:$16 sps:$4 sm:$0xff]   ;;  %v4357_v53 = vld [vmem:[%s6332_s2 + $0x384] ss:$16 sps:$4 sm:$0xff]  }
  0x34   :  { %1296 = vmatprep.subr.bf16.mxu0 %v4263_v54  ;;  %1460 = vmatprep.subr.bf16.mxu1 %v4265_v55  ;;  %v4360_v54 = vld [vmem:[%s6332_s2 + $0x38c] ss:$16 sps:$4 sm:$0xff]   ;;  %v4355_v55 = vld [vmem:[%s6332_s2 + $0x380] ss:$16 sps:$4 sm:$0xff]  }
  0x37   :  { %1297 = vmatpush1.bf16.msra.mxu0 %v4267_v56  ;;  %1461 = vmatpush1.bf16.msra.mxu1 %v4268_v57  ;;  %v4358_v56 = vld [vmem:[%s6332_s2 + $0x388] ss:$16 sps:$4 sm:$0xff]   ;;  %v4363_v57 = vld [vmem:[%s6332_s2 + $0x3a4] ss:$16 sps:$4 sm:$0xff]  }
  0x38   :  { %1298 = vmatprep.subr.bf16.mxu0 %v4269_v58  ;;  %1462 = vmatprep.subr.bf16.mxu1 %v4271_v59  ;;  %v4366_v58 = vld [vmem:[%s6332_s2 + $0x3ac] ss:$16 sps:$4 sm:$0xff]   ;;  %v4361_v59 = vld [vmem:[%s6332_s2 + $0x3a0] ss:$16 sps:$4 sm:$0xff]  }
  0x3b   :  { %1299 = vmatpush1.bf16.msra.mxu0 %v4273_v60  ;;  %1463 = vmatpush1.bf16.msra.mxu1 %v4274_v61  ;;  %v4364_v60 = vld [vmem:[%s6332_s2 + $0x3a8] ss:$16 sps:$4 sm:$0xff]   ;;  %v4369_v61 = vld [vmem:[%s6332_s2 + $0x3c4] ss:$16 sps:$4 sm:$0xff]  }
  0x3c   :  { %1300 = vmatprep.subr.bf16.mxu0 %v4275_v62  ;;  %1464 = vmatprep.subr.bf16.mxu1 %v4277_v63  ;;  %v4372_v62 = vld [vmem:[%s6332_s2 + $0x3cc] ss:$16 sps:$4 sm:$0xff]   ;;  %v4367_v63 = vld [vmem:[%s6332_s2 + $0x3c0] ss:$16 sps:$4 sm:$0xff]  }
  0x3f   :  { %1301 = vmatpush1.bf16.msra.mxu0 %v4279_v0  ;;  %1465 = vmatpush1.bf16.msra.mxu1 %v4280_v1  ;;  %v4370_v0 = vld [vmem:[%s6332_s2 + $0x3c8] ss:$16 sps:$4 sm:$0xff]   ;;  %v4375_v1 = vld [vmem:[%s6332_s2 + $0x3e4] ss:$16 sps:$4 sm:$0xff]  }
  0x40   :  { %1311 = vmatprep.subr.bf16.mxu0 %v4285_v2  ;;  %1475 = vmatprep.subr.bf16.mxu1 %v4288_v3  ;;  %v4378_v2 = vld [vmem:[%s6332_s2 + $0x3ec] ss:$16 sps:$4 sm:$0xff]   ;;  %v4373_v3 = vld [vmem:[%s6332_s2 + $0x3e0] ss:$16 sps:$4 sm:$0xff]  }
  0x42   :  { %1303 = vmatmul.mubr.bf16.vlgmr.msra.gmra.mrb[0].mxu0 %v3655_v4  ;;  %1467 = vmatmul.mubr.bf16.vlgmr.msra.gmra.mrb[0].mxu1 %v3655_v4  ;;  %v4376_v4 = vld [vmem:[%s6332_s2 + $0x3e8] ss:$16 sps:$4 sm:$0xff]  }
  0x43   :  { %1312 = vmatpush1.bf16.msra.mxu0 %v4283_v5  ;;  %1476 = vmatpush1.bf16.msra.mxu1 %v4286_v6  ;;  %v4383_v5 = vld [vmem:[%s6332_s2 + $0x404] ss:$16 sps:$4 sm:$0xff]   ;;  %v4386_v6 = vld [vmem:[%s6332_s2 + $0x40c] ss:$16 sps:$4 sm:$0xff]  }
  0x44   :  { %1313 = vmatprep.subr.bf16.mxu0 %v4291_v7  ;;  %1477 = vmatprep.subr.bf16.mxu1 %v4294_v8  ;;  %v3657_v7 = vcombine.low %v5203_v29, %v5203_v29  ;;  %v4381_v8 = vld [vmem:[%s6332_s2 + $0x400] ss:$16 sps:$4 sm:$0xff]   ;;  %v4416_v29 = vld [vmem:[%s6332_s2 + $0x4ac] ss:$16 sps:$4 sm:$0xff]  }
  0x45   :  { %1343 = vmatprep.mubr.bf16.mxu0 %v3658_v30  ;;  %1507 = vmatprep.mubr.bf16.mxu1 %v3658_v30  ;;  %v4411_v30 = vld [vmem:[%s6332_s2 + $0x4a0] ss:$16 sps:$4 sm:$0xff]  }
  0x47   :  { %1314 = vmatpush1.bf16.msra.mxu0 %v4289_v9  ;;  %1478 = vmatpush1.bf16.msra.mxu1 %v4292_v10  ;;  %v4384_v9 = vld [vmem:[%s6332_s2 + $0x408] ss:$16 sps:$4 sm:$0xff]   ;;  %v4389_v10 = vld [vmem:[%s6332_s2 + $0x424] ss:$16 sps:$4 sm:$0xff]  }
  0x48   :  { %1315 = vmatprep.subr.bf16.mxu0 %v4297_v11  ;;  %1479 = vmatprep.subr.bf16.mxu1 %v4300_v12  ;;  %v5341_v11 = vld [vmem:[%s6330_s0 + $0x10] sm:$0xff]  ;;  %v4392_v12 = vld [vmem:[%s6332_s2 + $0x42c] ss:$16 sps:$4 sm:$0xff]  }
  0x4b   :  { %1316 = vmatpush1.bf16.msra.mxu0 %v4295_v13  ;;  %1480 = vmatpush1.bf16.msra.mxu1 %v4298_v14  ;;  %v3660_v13 = vcombine.high %v5341_v11, %v5341_v11  ;;  %v4387_v14 = vld [vmem:[%s6332_s2 + $0x420] ss:$16 sps:$4 sm:$0xff]  }
  0x4c   :  { %1317 = vmatprep.subr.bf16.mxu0 %v4303_v15  ;;  %1481 = vmatprep.subr.bf16.mxu1 %v4306_v16  ;;  %v4390_v15 = vld [vmem:[%s6332_s2 + $0x428] ss:$16 sps:$4 sm:$0xff]   ;;  %v4395_v16 = vld [vmem:[%s6332_s2 + $0x444] ss:$16 sps:$4 sm:$0xff]  }
  0x4f   :  { %1318 = vmatpush1.bf16.msra.mxu0 %v4301_v17  ;;  %1482 = vmatpush1.bf16.msra.mxu1 %v4304_v18  ;;  %v4398_v17 = vld [vmem:[%s6332_s2 + $0x44c] ss:$16 sps:$4 sm:$0xff]   ;;  %v4393_v18 = vld [vmem:[%s6332_s2 + $0x440] ss:$16 sps:$4 sm:$0xff]  }
  0x50   :  { %1319 = vmatprep.subr.bf16.mxu0 %v4309_v19  ;;  %1483 = vmatprep.subr.bf16.mxu1 %v4312_v20  ;;  %v4396_v19 = vld [vmem:[%s6332_s2 + $0x448] ss:$16 sps:$4 sm:$0xff]   ;;  %v4401_v20 = vld [vmem:[%s6332_s2 + $0x464] ss:$16 sps:$4 sm:$0xff]  }
  0x53   :  { %1320 = vmatpush1.bf16.msra.mxu0 %v4307_v21  ;;  %1484 = vmatpush1.bf16.msra.mxu1 %v4310_v22  ;;  %v4404_v21 = vld [vmem:[%s6332_s2 + $0x46c] ss:$16 sps:$4 sm:$0xff]   ;;  %v4399_v22 = vld [vmem:[%s6332_s2 + $0x460] ss:$16 sps:$4 sm:$0xff]  }
  0x54   :  { %1321 = vmatprep.subr.bf16.mxu0 %v4315_v23  ;;  %1485 = vmatprep.subr.bf16.mxu1 %v4318_v24  ;;  %v4402_v23 = vld [vmem:[%s6332_s2 + $0x468] ss:$16 sps:$4 sm:$0xff]   ;;  %v4407_v24 = vld [vmem:[%s6332_s2 + $0x484] ss:$16 sps:$4 sm:$0xff]  }
  0x57   :  { %1322 = vmatpush1.bf16.msra.mxu0 %v4313_v25  ;;  %1486 = vmatpush1.bf16.msra.mxu1 %v4316_v26  ;;  %v4410_v25 = vld [vmem:[%s6332_s2 + $0x48c] ss:$16 sps:$4 sm:$0xff]   ;;  %v4405_v26 = vld [vmem:[%s6332_s2 + $0x480] ss:$16 sps:$4 sm:$0xff]  }
  0x58   :  { %1323 = vmatprep.subr.bf16.mxu0 %v4321_v27  ;;  %1487 = vmatprep.subr.bf16.mxu1 %v4324_v28  ;;  %v4408_v27 = vld [vmem:[%s6332_s2 + $0x488] ss:$16 sps:$4 sm:$0xff]   ;;  %v4413_v28 = vld [vmem:[%s6332_s2 + $0x4a4] ss:$16 sps:$4 sm:$0xff]  }
  0x5b   :  { %1324 = vmatpush1.bf16.msra.mxu0 %v4319_v31  ;;  %1488 = vmatpush1.bf16.msra.mxu1 %v4322_v32  ;;  %v4414_v31 = vld [vmem:[%s6332_s2 + $0x4a8] ss:$16 sps:$4 sm:$0xff]   ;;  %v4419_v32 = vld [vmem:[%s6332_s2 + $0x4c4] ss:$16 sps:$4 sm:$0xff]  }
  0x5c   :  { %1325 = vmatprep.subr.bf16.mxu0 %v4327_v33  ;;  %1489 = vmatprep.subr.bf16.mxu1 %v4330_v34  ;;  %v4422_v33 = vld [vmem:[%s6332_s2 + $0x4cc] ss:$16 sps:$4 sm:$0xff]   ;;  %v4417_v34 = vld [vmem:[%s6332_s2 + $0x4c0] ss:$16 sps:$4 sm:$0xff]  }
  0x5f   :  { %1326 = vmatpush1.bf16.msra.mxu0 %v4325_v35  ;;  %1490 = vmatpush1.bf16.msra.mxu1 %v4328_v36  ;;  %v4420_v35 = vld [vmem:[%s6332_s2 + $0x4c8] ss:$16 sps:$4 sm:$0xff]   ;;  %v4425_v36 = vld [vmem:[%s6332_s2 + $0x4e4] ss:$16 sps:$4 sm:$0xff]  }
  0x60   :  { %1327 = vmatprep.subr.bf16.mxu0 %v4333_v37  ;;  %1491 = vmatprep.subr.bf16.mxu1 %v4336_v38  ;;  %v4428_v37 = vld [vmem:[%s6332_s2 + $0x4ec] ss:$16 sps:$4 sm:$0xff]   ;;  %v4423_v38 = vld [vmem:[%s6332_s2 + $0x4e0] ss:$16 sps:$4 sm:$0xff]  }
  0x63   :  { %1328 = vmatpush1.bf16.msra.mxu0 %v4331_v39  ;;  %1492 = vmatpush1.bf16.msra.mxu1 %v4334_v40  ;;  %v4426_v39 = vld [vmem:[%s6332_s2 + $0x4e8] ss:$16 sps:$4 sm:$0xff]   ;;  %v4431_v40 = vld [vmem:[%s6332_s2 + $0x504] ss:$16 sps:$4 sm:$0xff]  }
  0x64   :  { %1329 = vmatprep.subr.bf16.mxu0 %v4339_v41  ;;  %1493 = vmatprep.subr.bf16.mxu1 %v4342_v42  ;;  %v4434_v41 = vld [vmem:[%s6332_s2 + $0x50c] ss:$16 sps:$4 sm:$0xff]   ;;  %v4429_v42 = vld [vmem:[%s6332_s2 + $0x500] ss:$16 sps:$4 sm:$0xff]  }
  0x67   :  { %1330 = vmatpush1.bf16.msra.mxu0 %v4337_v43  ;;  %1494 = vmatpush1.bf16.msra.mxu1 %v4340_v44  ;;  %v4432_v43 = vld [vmem:[%s6332_s2 + $0x508] ss:$16 sps:$4 sm:$0xff]   ;;  %v4437_v44 = vld [vmem:[%s6332_s2 + $0x524] ss:$16 sps:$4 sm:$0xff]  }
  0x68   :  { %1331 = vmatprep.subr.bf16.mxu0 %v4345_v45  ;;  %1495 = vmatprep.subr.bf16.mxu1 %v4348_v46  ;;  %v4440_v45 = vld [vmem:[%s6332_s2 + $0x52c] ss:$16 sps:$4 sm:$0xff]   ;;  %v4435_v46 = vld [vmem:[%s6332_s2 + $0x520] ss:$16 sps:$4 sm:$0xff]  }
  0x6b   :  { %1332 = vmatpush1.bf16.msra.mxu0 %v4343_v47  ;;  %1496 = vmatpush1.bf16.msra.mxu1 %v4346_v48  ;;  %v4438_v47 = vld [vmem:[%s6332_s2 + $0x528] ss:$16 sps:$4 sm:$0xff]   ;;  %v4443_v48 = vld [vmem:[%s6332_s2 + $0x544] ss:$16 sps:$4 sm:$0xff]  }
  0x6c   :  { %1333 = vmatprep.subr.bf16.mxu0 %v4351_v49  ;;  %1497 = vmatprep.subr.bf16.mxu1 %v4354_v50  ;;  %v4446_v49 = vld [vmem:[%s6332_s2 + $0x54c] ss:$16 sps:$4 sm:$0xff]   ;;  %v4441_v50 = vld [vmem:[%s6332_s2 + $0x540] ss:$16 sps:$4 sm:$0xff]  }
  0x6f   :  { %1334 = vmatpush1.bf16.msra.mxu0 %v4349_v51  ;;  %1498 = vmatpush1.bf16.msra.mxu1 %v4352_v52  ;;  %v4444_v51 = vld [vmem:[%s6332_s2 + $0x548] ss:$16 sps:$4 sm:$0xff]   ;;  %v4449_v52 = vld [vmem:[%s6332_s2 + $0x564] ss:$16 sps:$4 sm:$0xff]  }
  0x70   :  { %1335 = vmatprep.subr.bf16.mxu0 %v4357_v53  ;;  %1499 = vmatprep.subr.bf16.mxu1 %v4360_v54  ;;  %v4452_v53 = vld [vmem:[%s6332_s2 + $0x56c] ss:$16 sps:$4 sm:$0xff]   ;;  %v4447_v54 = vld [vmem:[%s6332_s2 + $0x560] ss:$16 sps:$4 sm:$0xff]  }
  0x73   :  { %1336 = vmatpush1.bf16.msra.mxu0 %v4355_v55  ;;  %1500 = vmatpush1.bf16.msra.mxu1 %v4358_v56  ;;  %v4450_v55 = vld [vmem:[%s6332_s2 + $0x568] ss:$16 sps:$4 sm:$0xff]   ;;  %v4455_v56 = vld [vmem:[%s6332_s2 + $0x584] ss:$16 sps:$4 sm:$0xff]  }
  0x74   :  { %1337 = vmatprep.subr.bf16.mxu0 %v4363_v57  ;;  %1501 = vmatprep.subr.bf16.mxu1 %v4366_v58  ;;  %v4458_v57 = vld [vmem:[%s6332_s2 + $0x58c] ss:$16 sps:$4 sm:$0xff]   ;;  %v4453_v58 = vld [vmem:[%s6332_s2 + $0x580] ss:$16 sps:$4 sm:$0xff]  }
  0x77   :  { %1338 = vmatpush1.bf16.msra.mxu0 %v4361_v59  ;;  %1502 = vmatpush1.bf16.msra.mxu1 %v4364_v60  ;;  %v4456_v59 = vld [vmem:[%s6332_s2 + $0x588] ss:$16 sps:$4 sm:$0xff]   ;;  %v4461_v60 = vld [vmem:[%s6332_s2 + $0x5a4] ss:$16 sps:$4 sm:$0xff]  }
  0x78   :  { %1339 = vmatprep.subr.bf16.mxu0 %v4369_v61  ;;  %1503 = vmatprep.subr.bf16.mxu1 %v4372_v62  ;;  %v4464_v61 = vld [vmem:[%s6332_s2 + $0x5ac] ss:$16 sps:$4 sm:$0xff]   ;;  %v4459_v62 = vld [vmem:[%s6332_s2 + $0x5a0] ss:$16 sps:$4 sm:$0xff]  }
  0x7b   :  { %1340 = vmatpush1.bf16.msra.mxu0 %v4367_v63  ;;  %1504 = vmatpush1.bf16.msra.mxu1 %v4370_v0  ;;  %v4462_v63 = vld [vmem:[%s6332_s2 + $0x5a8] ss:$16 sps:$4 sm:$0xff]   ;;  %v4467_v0 = vld [vmem:[%s6332_s2 + $0x5c4] ss:$16 sps:$4 sm:$0xff]  }
  0x7c   :  { %1341 = vmatprep.subr.bf16.mxu0 %v4375_v1  ;;  %1505 = vmatprep.subr.bf16.mxu1 %v4378_v2  ;;  %v4470_v1 = vld [vmem:[%s6332_s2 + $0x5cc] ss:$16 sps:$4 sm:$0xff]   ;;  %v4465_v2 = vld [vmem:[%s6332_s2 + $0x5c0] ss:$16 sps:$4 sm:$0xff]  }
  0x7f   :  { %1342 = vmatpush1.bf16.msra.mxu0 %v4373_v3  ;;  %1506 = vmatpush1.bf16.msra.mxu1 %v4376_v4  ;;  %v4468_v3 = vld [vmem:[%s6332_s2 + $0x5c8] ss:$16 sps:$4 sm:$0xff]   ;;  %v4473_v4 = vld [vmem:[%s6332_s2 + $0x5e4] ss:$16 sps:$4 sm:$0xff]  }
  0x80   :  { %1352 = vmatprep.subr.bf16.mxu0 %v4383_v5  ;;  %1516 = vmatprep.subr.bf16.mxu1 %v4386_v6  ;;  %v4476_v5 = vld [vmem:[%s6332_s2 + $0x5ec] ss:$16 sps:$4 sm:$0xff]   ;;  %v4471_v6 = vld [vmem:[%s6332_s2 + $0x5e0] ss:$16 sps:$4 sm:$0xff]  }
  0x82   :  { %1344 = vmatmul.mubr.bf16.vlgmr.msra.gmra.mrb[0].mxu0 %v3657_v7  ;;  %1508 = vmatmul.mubr.bf16.vlgmr.msra.gmra.mrb[0].mxu1 %v3657_v7  ;;  %v4474_v7 = vld [vmem:[%s6332_s2 + $0x5e8] ss:$16 sps:$4 sm:$0xff]  }
  0x83   :  { %1353 = vmatpush1.bf16.msra.mxu0 %v4381_v8  ;;  %1517 = vmatpush1.bf16.msra.mxu1 %v4384_v9  ;;  %v4481_v8 = vld [vmem:[%s6332_s2 + $0x604] ss:$16 sps:$4 sm:$0xff]   ;;  %v4484_v9 = vld [vmem:[%s6332_s2 + $0x60c] ss:$16 sps:$4 sm:$0xff]  }
  0x84   :  { %1354 = vmatprep.subr.bf16.mxu0 %v4389_v10  ;;  %1518 = vmatprep.subr.bf16.mxu1 %v4392_v12  ;;  %v4479_v10 = vld [vmem:[%s6332_s2 + $0x600] ss:$16 sps:$4 sm:$0xff]   ;;  %v4482_v12 = vld [vmem:[%s6332_s2 + $0x608] ss:$16 sps:$4 sm:$0xff]  }
  0x85   :  { %1384 = vmatprep.mubr.bf16.mxu0 %v3660_v13  ;;  %1548 = vmatprep.mubr.bf16.mxu1 %v3660_v13  ;;  %v3659_v13 = vcombine.low %v5341_v11, %v5341_v11  ;;  %v4485_v11 = vld [vmem:[%s6330_s0 + $0x18] ss:$0 sps:$4 sm:$0xff]  }
  0x87   :  { %1355 = vmatpush1.bf16.msra.mxu0 %v4387_v14  ;;  %1519 = vmatpush1.bf16.msra.mxu1 %v4390_v15  ;;  %v4487_v14 = vld [vmem:[%s6334_s4 + $0x40] sm:$0xff]   ;;  %v4863_v15 = vmov 0  }
  0x88   :  { %1356 = vmatprep.subr.bf16.mxu0 %v4395_v16  ;;  %1520 = vmatprep.subr.bf16.mxu1 %v4398_v17  ;;  %v4486_v16 = vld [vmem:[%s6334_s4 + $0x80] sm:$0xff]  }
  0x89   :  { %v4488_v17 = vld [vmem:[%s6334_s4] sm:$0xff]  }
  0x8b   :  { %1357 = vmatpush1.bf16.msra.mxu0 %v4393_v18  ;;  %1521 = vmatpush1.bf16.msra.mxu1 %v4396_v19  ;;  %v4490_v18 = vld [vmem:[%s6334_s4 + $0x48] sm:$0xff]  }
  0x8c   :  { %1358 = vmatprep.subr.bf16.mxu0 %v4401_v20  ;;  %1522 = vmatprep.subr.bf16.mxu1 %v4404_v21  ;;  %v4489_v19 = vld [vmem:[%s6334_s4 + $0x88] sm:$0xff]   ;;  %v4493_v21 = vld [vmem:[%s6334_s4 + $0x50] sm:$0xff]  }
  0x8d   :  { %v4491_v20 = vld [vmem:[%s6334_s4 + $0x8] sm:$0xff]  }
  0x8f   :  { %1359 = vmatpush1.bf16.msra.mxu0 %v4399_v22  ;;  %1523 = vmatpush1.bf16.msra.mxu1 %v4402_v23  ;;  %v4492_v22 = vld [vmem:[%s6334_s4 + $0x90] sm:$0xff]  }
  0x90   :  { %1360 = vmatprep.subr.bf16.mxu0 %v4407_v24  ;;  %1524 = vmatprep.subr.bf16.mxu1 %v4410_v25  ;;  %v4494_v23 = vld [vmem:[%s6334_s4 + $0x10] sm:$0xff]   ;;  %v4496_v24 = vld [vmem:[%s6334_s4 + $0x58] sm:$0xff]  }
  0x91   :  { %v4495_v25 = vld [vmem:[%s6334_s4 + $0x98] sm:$0xff]  }
  0x93   :  { %1361 = vmatpush1.bf16.msra.mxu0 %v4405_v26  ;;  %1525 = vmatpush1.bf16.msra.mxu1 %v4408_v27  ;;  %v4497_v26 = vld [vmem:[%s6334_s4 + $0x18] sm:$0xff]   ;;  %v4499_v27 = vld [vmem:[%s6334_s4 + $0x60] sm:$0xff]  }
  0x94   :  { %1362 = vmatprep.subr.bf16.mxu0 %v4413_v28  ;;  %1526 = vmatprep.subr.bf16.mxu1 %v4416_v29  ;;  %v4498_v28 = vld [vmem:[%s6334_s4 + $0xa0] sm:$0xff]  }
  0x95   :  { %v4500_v29 = vld [vmem:[%s6334_s4 + $0x20] sm:$0xff]  }
  0x97   :  { %1363 = vmatpush1.bf16.msra.mxu0 %v4411_v30  ;;  %1527 = vmatpush1.bf16.msra.mxu1 %v4414_v31  ;;  %v4502_v30 = vld [vmem:[%s6334_s4 + $0x68] sm:$0xff]  }
  0x98   :  { %1364 = vmatprep.subr.bf16.mxu0 %v4419_v32  ;;  %1528 = vmatprep.subr.bf16.mxu1 %v4422_v33  ;;  %v4501_v31 = vld [vmem:[%s6334_s4 + $0xa8] sm:$0xff]   ;;  %v4505_v33 = vld [vmem:[%s6334_s4 + $0x70] sm:$0xff]  }
  0x99   :  { %v4503_v32 = vld [vmem:[%s6334_s4 + $0x28] sm:$0xff]  }
  0x9b   :  { %1365 = vmatpush1.bf16.msra.mxu0 %v4417_v34  ;;  %1529 = vmatpush1.bf16.msra.mxu1 %v4420_v35  ;;  %v4504_v34 = vld [vmem:[%s6334_s4 + $0xb0] sm:$0xff]  }
  0x9c   :  { %1366 = vmatprep.subr.bf16.mxu0 %v4425_v36  ;;  %1530 = vmatprep.subr.bf16.mxu1 %v4428_v37 }
  0x9f   :  { %1367 = vmatpush1.bf16.msra.mxu0 %v4423_v38  ;;  %1531 = vmatpush1.bf16.msra.mxu1 %v4426_v39 }
  0xa0   :  { %1368 = vmatprep.subr.bf16.mxu0 %v4431_v40  ;;  %1532 = vmatprep.subr.bf16.mxu1 %v4434_v41 }
  0xa3   :  { %1369 = vmatpush1.bf16.msra.mxu0 %v4429_v42  ;;  %1533 = vmatpush1.bf16.msra.mxu1 %v4432_v43 }
  0xa4   :  { %1370 = vmatprep.subr.bf16.mxu0 %v4437_v44  ;;  %1534 = vmatprep.subr.bf16.mxu1 %v4440_v45 }
  0xa7   :  { %1371 = vmatpush1.bf16.msra.mxu0 %v4435_v46  ;;  %1535 = vmatpush1.bf16.msra.mxu1 %v4438_v47 }
  0xa8   :  { %1372 = vmatprep.subr.bf16.mxu0 %v4443_v48  ;;  %1536 = vmatprep.subr.bf16.mxu1 %v4446_v49 }
  0xab   :  { %1373 = vmatpush1.bf16.msra.mxu0 %v4441_v50  ;;  %1537 = vmatpush1.bf16.msra.mxu1 %v4444_v51 }
  0xac   :  { %1374 = vmatprep.subr.bf16.mxu0 %v4449_v52  ;;  %1538 = vmatprep.subr.bf16.mxu1 %v4452_v53 }
  0xaf   :  { %1375 = vmatpush1.bf16.msra.mxu0 %v4447_v54  ;;  %1539 = vmatpush1.bf16.msra.mxu1 %v4450_v55 }
  0xb0   :  { %1376 = vmatprep.subr.bf16.mxu0 %v4455_v56  ;;  %1540 = vmatprep.subr.bf16.mxu1 %v4458_v57 }
  0xb3   :  { %1377 = vmatpush1.bf16.msra.mxu0 %v4453_v58  ;;  %1541 = vmatpush1.bf16.msra.mxu1 %v4456_v59 }
  0xb4   :  { %1378 = vmatprep.subr.bf16.mxu0 %v4461_v60  ;;  %1542 = vmatprep.subr.bf16.mxu1 %v4464_v61 }
  0xb7   :  { %1379 = vmatpush1.bf16.msra.mxu0 %v4459_v62  ;;  %1543 = vmatpush1.bf16.msra.mxu1 %v4462_v63 }
  0xb8   :  { %1380 = vmatprep.subr.bf16.mxu0 %v4467_v0  ;;  %1544 = vmatprep.subr.bf16.mxu1 %v4470_v1 }
  0xbb   :  { %1381 = vmatpush1.bf16.msra.mxu0 %v4465_v2  ;;  %1545 = vmatpush1.bf16.msra.mxu1 %v4468_v3 }
  0xbc   :  { %1382 = vmatprep.subr.bf16.mxu0 %v4473_v4  ;;  %1546 = vmatprep.subr.bf16.mxu1 %v4476_v5 }
  0xbf   :  { %1383 = vmatpush1.bf16.msra.mxu0 %v4471_v6  ;;  %1547 = vmatpush1.bf16.msra.mxu1 %v4474_v7 }
  0xc0   :  { %1393 = vmatprep.subr.bf16.mxu0 %v4481_v8  ;;  %1557 = vmatprep.subr.bf16.mxu1 %v4484_v9 }
  0xc2   :  { %1385 = vmatmul.mubr.bf16.vlgmr.msra.gmra.mrb[0].mxu0 %v3659_v13  ;;  %1549 = vmatmul.mubr.bf16.vlgmr.msra.gmra.mrb[0].mxu1 %v3659_v13 }
  0xc3   :  { %1394 = vmatpush1.bf16.msra.mxu0 %v4479_v10  ;;  %1558 = vmatpush1.bf16.msra.mxu1 %v4482_v12 }
  0xc4   :  { %1425 = vmatprep.mubr.bf16.mxu0 %v4863_v15  ;;  %1589 = vmatprep.mubr.bf16.mxu1 %v4863_v15 }
  0xc5   :  { %1852 = vmatprep.subr.bf16.mxu1 %v4863_v15  ;;  %4091 = vmatprep.subr.bf16.mxu0 %v4487_v14 }
  0xce   :  { %3858 = vmatmul.mubr.msk.bf16.vlgmr.msra.gmra.mrb[0].mxu0 %vm1266_vm0, %v4485_v11  ;;  %3859 = vmatmul.mubr.msk.bf16.vlgmr.msra.gmra.mrb[0].mxu1 %vm1266_vm0, %v4485_v11 }
  0xcf   :  { %1853 = vmatpush1.bf16.msra.mxu1 %v4486_v16  ;;  %4092 = vmatpush3.bf16.msra.mxu0 %v4488_v17 }
  0xd0   :  { %1854 = vmatprep.subr.bf16.mxu1 %v4863_v15  ;;  %4093 = vmatprep.subr.bf16.mxu0 %v4490_v18 }
  0xd3   :  { %1855 = vmatpush1.bf16.msra.mxu1 %v4489_v19  ;;  %4094 = vmatpush3.bf16.msra.mxu0 %v4491_v20 }
  0xd4   :  { %1856 = vmatprep.subr.bf16.mxu1 %v4863_v15  ;;  %4095 = vmatprep.subr.bf16.mxu0 %v4493_v21 }
  0xd7   :  { %1857 = vmatpush1.bf16.msra.mxu1 %v4492_v22  ;;  %4096 = vmatpush3.bf16.msra.mxu0 %v4494_v23 }
  0xd8   :  { %1858 = vmatprep.subr.bf16.mxu1 %v4863_v15  ;;  %4097 = vmatprep.subr.bf16.mxu0 %v4496_v24 }
  0xdb   :  { %1859 = vmatpush1.bf16.msra.mxu1 %v4495_v25  ;;  %4098 = vmatpush3.bf16.msra.mxu0 %v4497_v26 }
  0xdc   :  { %1860 = vmatprep.subr.bf16.mxu1 %v4863_v15  ;;  %4099 = vmatprep.subr.bf16.mxu0 %v4499_v27 }
  0xdf   :  { %1861 = vmatpush1.bf16.msra.mxu1 %v4498_v28  ;;  %4100 = vmatpush3.bf16.msra.mxu0 %v4500_v29 }
  0xe0   :  { %1862 = vmatprep.subr.bf16.mxu1 %v4863_v15  ;;  %4101 = vmatprep.subr.bf16.mxu0 %v4502_v30 }
  0xe3   :  { %1863 = vmatpush1.bf16.msra.mxu1 %v4501_v31  ;;  %4102 = vmatpush3.bf16.msra.mxu0 %v4503_v32 }
  0xe4   :  { %18 = vsyncpa [#allocation5], 0  ;;  %1864 = vmatprep.subr.bf16.mxu1 %v4863_v15  ;;  %4103 = vmatprep.subr.bf16.mxu0 %v4505_v33  ;;  %v4506_v35 = vld [vmem:[%s6334_s4 + $0x30] sm:$0xff]   ;;  %v4507_v36 = vld [vmem:[%s6334_s4 + $0xb8] sm:$0xff]   ;;  %v242_v40 = vlaneseq  ;;  %s4864_s23 = smov 64   ;;  %vm2021_vm1 = vcmask 523264  }
  0xe5   :  { %v4508_v37 = vld [vmem:[%s6334_s4 + $0x78] sm:$0xff]   ;;  %v4510_v39 = vld [vmem:[%s6334_s4 + $0xc0] sm:$0xff]   ;;  %v4549_v32 = vld [vmem:[%s6338_s8 + $0x74] ss:$28 sps:$4 sm:$0xff]  }
  0xe6   :  { %v4509_v38 = vld [vmem:[%s6334_s4 + $0x38] sm:$0xff]   ;;  %v5627_v41 = vshrl.u32 %v242_v40, 7  ;;  %v240_v44 = vld [vmem:[%s6333_s3] sm:$0xf]  ;;  %v4513_v4 = vld [vmem:[%s6336_s6 + $0x4] ss:$16 sps:$4 sm:$0xff]  }
  0xe7   :  { %1865 = vmatpush1.bf16.msra.mxu1 %v4504_v34  ;;  %4104 = vmatpush3.bf16.msra.mxu0 %v4506_v35  ;;  %v4511_v3 = vld [vmem:[%s6336_s6] ss:$16 sps:$4 sm:$0xff]   ;;  %v4516_v5 = vld [vmem:[%s6336_s6 + $0x24] ss:$16 sps:$4 sm:$0xff]   ;;  %v4525_v26 = vld [vmem:[%s6336_s6 + $0xc] ss:$16 sps:$4 sm:$0xff]  }
  0xe8   :  { %1866 = vmatprep.subr.bf16.mxu1 %v4863_v15  ;;  %4105 = vmatprep.subr.bf16.mxu0 %v4508_v37  ;;  %v5630_v42 = vsub.s32 0, %v5627_v41  ;;  %v5633_v43 = vsub.s32 2, %v5627_v41  ;;  %v5639_v45 = vsub.s32 1, %v5627_v41  ;;  %v5642_v46 = vsub.s32 3, %v5627_v41  ;;  %v4514_v6 = vld [vmem:[%s6336_s6 + $0x20] ss:$16 sps:$4 sm:$0xff]  }
  0xe9   :  { %v4519_v7 = vld [vmem:[%s6336_s6 + $0x44] ss:$16 sps:$4 sm:$0xff]   ;;  %v4517_v8 = vld [vmem:[%s6336_s6 + $0x40] ss:$16 sps:$4 sm:$0xff]   ;;  %v4543_v30 = vld [vmem:[%s6338_s8 + $0x3c] ss:$28 sps:$4 sm:$0xff]  }
  0xea   :  { %v245_v47 = vrot.slane %v240_v44, %v5630_v42  ;;  %v253_v48 = vrot.slane %v240_v44, %v5633_v43  ;;  %v249_v49 = vrot.slane %v240_v44, %v5639_v45  ;;  %v257_v50 = vrot.slane %v240_v44, %v5642_v46  ;;  %v3860_v12 = vld [vmem:[%s6335_s5] ss:$0 sm:$0xff]  ;;  %v4522_v23 = vld [vmem:[%s6336_s6 + $0x64] ss:$16 sps:$4 sm:$0xff]   ;;  %v4547_v33 = vld [vmem:[%s6338_s8 + $0x70] ss:$28 sps:$4 sm:$0xff]  }
  0xeb   :  { %1867 = vmatpush1.bf16.msra.mxu1 %v4507_v36  ;;  %4106 = vmatpush3.bf16.msra.mxu0 %v4509_v38  ;;  %v4520_v25 = vld [vmem:[%s6336_s6 + $0x60] ss:$16 sps:$4 sm:$0xff]   ;;  %v4541_v31 = vld [vmem:[%s6338_s8 + $0x38] ss:$28 sps:$4 sm:$0xff]   ;;  %v4555_v34 = vld [vmem:[%s6338_s8 + $0xac] ss:$28 sps:$4 sm:$0xff]  }
  0xec   :  { %1868 = vmatprep.subr.bf16.mxu1 %v4863_v15  ;;  %v4535_v28 = vld [vmem:[%s6338_s8] ss:$28 sps:$4 sm:$0xff]   ;;  %v4553_v35 = vld [vmem:[%s6338_s8 + $0xa8] ss:$28 sps:$4 sm:$0xff]   ;;  %v4573_v40 = vld [vmem:[%s6338_s8 + $0x154] ss:$28 sps:$4 sm:$0xff]  }
  0xed   :  { %v4537_v29 = vld [vmem:[%s6338_s8 + $0x4] ss:$28 sps:$4 sm:$0xff]   ;;  %v4567_v38 = vld [vmem:[%s6338_s8 + $0x11c] ss:$28 sps:$4 sm:$0xff]   ;;  %v4571_v44 = vld [vmem:[%s6338_s8 + $0x150] ss:$28 sps:$4 sm:$0xff]  }
  0xee   :  { %3251 = vmatprep.subr.bf16.mxu0 %v4537_v29  ;;  %v4561_v36 = vld [vmem:[%s6338_s8 + $0xe4] ss:$28 sps:$4 sm:$0xff]  }
  0xef   :  { %1869 = vmatpush1.bf16.msra.mxu1 %v4510_v39  ;;  %v4559_v37 = vld [vmem:[%s6338_s8 + $0xe0] ss:$28 sps:$4 sm:$0xff]   ;;  %v4565_v39 = vld [vmem:[%s6338_s8 + $0x118] ss:$28 sps:$4 sm:$0xff]   ;;  %v4586_v29 = vld [vmem:[%s6338_s8 + $0x1c8] ss:$28 sps:$4 sm:$0xff]  }
  0xf0   :  { %2025 = vmatprep.subr.bf16.mxu1 %v4513_v4 }
 0x1a1   :  { %v1427_v51 = vpop.f32.mrb[0].mxu0  ;;  %v1591_v52 = vpop.f32.mrb[0].mxu1 }
 0x1a2   :  { %v4135_v53 = vadd.f32 %v1427_v51, %v245_v47  ;;  %v4137_v54 = vadd.f32 %v1591_v52, %v253_v48  ;;  %v1429_v55 = vpop.f32.mrb[1].mxu0  ;;  %v1593_v56 = vpop.f32.mrb[1].mxu1  ;;  %v4579_v47 = vld [vmem:[%s6338_s8 + $0x18c] ss:$28 sps:$4 sm:$0xff]   ;;  %v4591_v51 = vld [vmem:[%s6338_s8 + $0x1fc] ss:$28 sps:$4 sm:$0xff]  }
 0x1a3   :  { %v4136_v57 = vadd.f32 %v1429_v55, %v249_v49  ;;  %v4138_v58 = vadd.f32 %v1593_v56, %v257_v50  ;;  %v1431_v59 = vpop.f32.mrb[2].mxu0  ;;  %v1595_v60 = vpop.f32.mrb[2].mxu1  ;;  %v4577_v48 = vld [vmem:[%s6338_s8 + $0x188] ss:$28 sps:$4 sm:$0xff]   ;;  %v4583_v50 = vld [vmem:[%s6338_s8 + $0x1c0] ss:$28 sps:$4 sm:$0xff]  }
 0x1a4   :  { %v1432_v61 = vpop.f32.mrb[3].mxu0  ;;  %v1596_v62 = vpop.f32.mrb[3].mxu1  ;;  %v1598_v1 = vpack.c.bf16 %v4135_v53, %v4135_v53  ;;  %v1600_v2 = vpack.c.bf16 %v4137_v54, %v4137_v54  ;;  %v4585_v49 = vld [vmem:[%s6338_s8 + $0x1c4] ss:$28 sps:$4 sm:$0xff]   ;;  %v4589_v52 = vld [vmem:[%s6338_s8 + $0x1f8] ss:$28 sps:$4 sm:$0xff]  }
 0x1a5   :  { %v1599_v63 = vpack.c.bf16 %v4136_v57, %v4136_v57  ;;  %v1601_v0 = vpack.c.bf16 %v4138_v58, %v4138_v58  ;;  %v4597_v53 = vld [vmem:[%s6338_s8 + $0x234] ss:$28 sps:$4 sm:$0xff]   ;;  %v4603_v55 = vld [vmem:[%s6338_s8 + $0x26c] ss:$28 sps:$4 sm:$0xff]   ;;  %v4609_v57 = vld [vmem:[%s6338_s8 + $0x2a4] ss:$28 sps:$4 sm:$0xff]  }
 0x1a6   :  { %v4595_v54 = vld [vmem:[%s6338_s8 + $0x230] ss:$28 sps:$4 sm:$0xff]   ;;  %v4601_v56 = vld [vmem:[%s6338_s8 + $0x268] ss:$28 sps:$4 sm:$0xff]   ;;  %v4607_v58 = vld [vmem:[%s6338_s8 + $0x2a0] ss:$28 sps:$4 sm:$0xff]  }
 0x1a7   :  { %1844 = vmatprep.mubr.bf16.mxu0 %v1599_v63  ;;  %3886 = vmatprep.mubr.msk.bf16.mxu1 %vm1266_vm0, %v1601_v0  ;;  %v4615_v59 = vld [vmem:[%s6338_s8 + $0x2dc] ss:$28 sps:$4 sm:$0xff]   ;;  %v4621_v61 = vld [vmem:[%s6338_s8 + $0x314] ss:$28 sps:$4 sm:$0xff]   ;;  %v1892_v63 = vld [vmem:[%s6331_s1] sm:$0xff] }
 0x1a8   :  { %1845 = vmatmul.mubr.bf16.vlgmr.msra.gmra.mrb[4].mxu0 %v1598_v1  ;;  %1885 = vmatmul.mubr.bf16.vlgmr.msra.gmra.mrb[4].mxu1 %v1600_v2  ;;  %v4613_v60 = vld [vmem:[%s6338_s8 + $0x2d8] ss:$28 sps:$4 sm:$0xff]   ;;  %v4619_v62 = vld [vmem:[%s6338_s8 + $0x310] ss:$28 sps:$4 sm:$0xff]  }
 0x1a9   :  { %2057 = vmatprep.mubr.bf16.mxu1 %v4863_v15  ;;  %2026 = vmatpush1.bf16.msra.mxu1 %v4511_v3  ;;  %v4523_v3 = vld [vmem:[%s6336_s6 + $0x8] ss:$16 sps:$4 sm:$0xff]  }
 0x1aa   :  { %2027 = vmatprep.subr.bf16.mxu1 %v4516_v5  ;;  %3252 = vmatpush1.bf16.msra.mxu0 %v4535_v28  ;;  %v4528_v5 = vld [vmem:[%s6336_s6 + $0x2c] ss:$16 sps:$4 sm:$0xff]  }
 0x1ab   :  { %3253 = vmatprep.subr.bf16.mxu0 %v4543_v30  ;;  %v4588_v28 = vld [vmem:[%s6338_s8 + $0x1cc] ss:$28 sps:$4 sm:$0xff]   ;;  %v4594_v30 = vld [vmem:[%s6338_s8 + $0x204] ss:$28 sps:$4 sm:$0xff]  }
 0x1ad   :  { %2028 = vmatpush1.bf16.msra.mxu1 %v4514_v6  ;;  %v4526_v6 = vld [vmem:[%s6336_s6 + $0x28] ss:$16 sps:$4 sm:$0xff]  }
 0x1ae   :  { %2029 = vmatprep.subr.bf16.mxu1 %v4519_v7  ;;  %3254 = vmatpush1.bf16.msra.mxu0 %v4541_v31  ;;  %v4531_v7 = vld [vmem:[%s6336_s6 + $0x4c] ss:$16 sps:$4 sm:$0xff]  }
 0x1af   :  { %3255 = vmatprep.subr.bf16.mxu0 %v4549_v32  ;;  %v4592_v31 = vld [vmem:[%s6338_s8 + $0x200] ss:$28 sps:$4 sm:$0xff]  }
 0x1b0   :  { %v4600_v32 = vld [vmem:[%s6338_s8 + $0x23c] ss:$28 sps:$4 sm:$0xff]  }
 0x1b1   :  { %2030 = vmatpush1.bf16.msra.mxu1 %v4517_v8  ;;  %v4529_v8 = vld [vmem:[%s6336_s6 + $0x48] ss:$16 sps:$4 sm:$0xff]  }
 0x1b2   :  { %2031 = vmatprep.subr.bf16.mxu1 %v4522_v23  ;;  %3256 = vmatpush1.bf16.msra.mxu0 %v4547_v33  ;;  %v4568_v23 = vld [vmem:[%s6338_s8 + $0x120] ss:$28 sps:$4 sm:$0xff]   ;;  %v4598_v33 = vld [vmem:[%s6338_s8 + $0x238] ss:$28 sps:$4 sm:$0xff]  }
 0x1b3   :  { %3257 = vmatprep.subr.bf16.mxu0 %v4555_v34  ;;  %v4606_v34 = vld [vmem:[%s6338_s8 + $0x274] ss:$28 sps:$4 sm:$0xff]  }
 0x1b5   :  { %2032 = vmatpush1.bf16.msra.mxu1 %v4520_v25  ;;  %v4574_v25 = vld [vmem:[%s6338_s8 + $0x158] ss:$28 sps:$4 sm:$0xff]  }
 0x1b6   :  { %2066 = vmatprep.subr.bf16.mxu1 %v4525_v26  ;;  %3258 = vmatpush1.bf16.msra.mxu0 %v4553_v35  ;;  %v4582_v26 = vld [vmem:[%s6338_s8 + $0x194] ss:$28 sps:$4 sm:$0xff]  }
 0x1b7   :  { %3259 = vmatprep.subr.bf16.mxu0 %v4561_v36  ;;  %v4604_v35 = vld [vmem:[%s6338_s8 + $0x270] ss:$28 sps:$4 sm:$0xff]  }
 0x1b8   :  { %v4612_v36 = vld [vmem:[%s6338_s8 + $0x2ac] ss:$28 sps:$4 sm:$0xff]  }
 0x1ba   :  { %3260 = vmatpush1.bf16.msra.mxu0 %v4559_v37  ;;  %v4610_v37 = vld [vmem:[%s6338_s8 + $0x2a8] ss:$28 sps:$4 sm:$0xff]  }
 0x1bb   :  { %3261 = vmatprep.subr.bf16.mxu0 %v4567_v38  ;;  %v4618_v38 = vld [vmem:[%s6338_s8 + $0x2e4] ss:$28 sps:$4 sm:$0xff]  }
 0x1be   :  { %3262 = vmatpush1.bf16.msra.mxu0 %v4565_v39  ;;  %v4616_v39 = vld [vmem:[%s6338_s8 + $0x2e0] ss:$28 sps:$4 sm:$0xff]  }
 0x1bf   :  { %3263 = vmatprep.subr.bf16.mxu0 %v4573_v40  ;;  %v4624_v40 = vld [vmem:[%s6338_s8 + $0x31c] ss:$28 sps:$4 sm:$0xff]  }
 0x1c2   :  { %3264 = vmatpush1.bf16.msra.mxu0 %v4571_v44  ;;  %v4622_v44 = vld [vmem:[%s6338_s8 + $0x318] ss:$28 sps:$4 sm:$0xff]  }
 0x1c3   :  { %3265 = vmatprep.subr.bf16.mxu0 %v4579_v47  ;;  %v4627_v47 = vld [vmem:[%s6338_s8 + $0x34c] ss:$28 sps:$4 sm:$0xff]  }
 0x1c6   :  { %3266 = vmatpush1.bf16.msra.mxu0 %v4577_v48  ;;  %v4630_v48 = vld [vmem:[%s6338_s8 + $0x354] ss:$28 sps:$4 sm:$0xff]  }
 0x1c7   :  { %3267 = vmatprep.subr.bf16.mxu0 %v4585_v49  ;;  %v4625_v49 = vld [vmem:[%s6338_s8 + $0x348] ss:$28 sps:$4 sm:$0xff]  }
 0x1ca   :  { %3268 = vmatpush1.bf16.msra.mxu0 %v4583_v50  ;;  %v4628_v50 = vld [vmem:[%s6338_s8 + $0x350] ss:$28 sps:$4 sm:$0xff]  }
 0x1cb   :  { %3269 = vmatprep.subr.bf16.mxu0 %v4591_v51  ;;  %v4633_v51 = vld [vmem:[%s6338_s8 + $0x384] ss:$28 sps:$4 sm:$0xff]  }
 0x1ce   :  { %3270 = vmatpush1.bf16.msra.mxu0 %v4589_v52  ;;  %v4636_v52 = vld [vmem:[%s6338_s8 + $0x38c] ss:$28 sps:$4 sm:$0xff]  }
 0x1cf   :  { %3271 = vmatprep.subr.bf16.mxu0 %v4597_v53  ;;  %v5913_v53 = vld [vmem:[%s6337_s7] sm:$0xf] }
 0x1d2   :  { %3272 = vmatpush1.bf16.msra.mxu0 %v4595_v54  ;;  %v1924_v54 = vrot.slane %v5913_v53, %v5630_v42 }
 0x1d3   :  { %3273 = vmatprep.subr.bf16.mxu0 %v4603_v55  ;;  %v1928_v55 = vrot.slane %v5913_v53, %v5639_v45 }
 0x1d6   :  { %3274 = vmatpush1.bf16.msra.mxu0 %v4601_v56 }
 0x1d7   :  { %3275 = vmatprep.subr.bf16.mxu0 %v4609_v57 }
 0x1da   :  { %3276 = vmatpush1.bf16.msra.mxu0 %v4607_v58 }
 0x1db   :  { %3277 = vmatprep.subr.bf16.mxu0 %v4615_v59 }
 0x1de   :  { %3278 = vmatpush1.bf16.msra.mxu0 %v4613_v60 }
 0x1df   :  { %3279 = vmatprep.subr.bf16.mxu0 %v4621_v61 }
 0x1e2   :  { %3280 = vmatpush1.bf16.msra.mxu0 %v4619_v62 }
 0x1e3   :  { %3281 = vmatprep.subr.bf16.mxu0 %v4627_v47  ;;  %v4682_v47 = vld [vmem:[%s6338_s8 + $0x548] ss:$28 sps:$4 sm:$0xff]  }
 0x1e6   :  { %3282 = vmatpush1.bf16.msra.mxu0 %v4625_v49  ;;  %v4687_v49 = vld [vmem:[%s6338_s8 + $0x14] ss:$28 sps:$4 sm:$0xff]  }
 0x1e7   :  { %3292 = vmatprep.subr.bf16.mxu0 %v4633_v51  ;;  %v4685_v51 = vld [vmem:[%s6338_s8 + $0x10] ss:$28 sps:$4 sm:$0xff]  }
 0x27b   :  { %v4107_v9 = vpop.f32.mrb[4].mxu0  ;;  %v1886_v10 = vpop.f32.mrb[4].mxu1 }
 0x27c   :  { %v4108_v13 = vpop.f32.mrb[5].mxu0  ;;  %v1888_v14 = vpop.f32.mrb[5].mxu1 }
 0x27d   :  { %v4109_v11 = vadd.f32 %v4108_v13, %v4107_v9  ;;  %v4110_v16 = vpop.f32.mrb[6].mxu0  ;;  %v1889_v17 = vpop.f32.mrb[6].mxu1  ;;  %v4534_v9 = vld [vmem:[%s6336_s6 + $0x6c] ss:$16 sps:$4 sm:$0xff]   ;;  %v4538_v13 = vld [vmem:[%s6338_s8 + $0x8] ss:$28 sps:$4 sm:$0xff]  }
 0x27e   :  { %v4111_v18 = vpop.f32.mrb[7].mxu0  ;;  %v1890_v19 = vpop.f32.mrb[7].mxu1  ;;  %v4546_v14 = vld [vmem:[%s6338_s8 + $0x44] ss:$28 sps:$4 sm:$0xff]   ;;  %v4552_v16 = vld [vmem:[%s6338_s8 + $0x7c] ss:$28 sps:$4 sm:$0xff]  }
 0x27f   :  { %v1847_v20 = vadd.f32 %v4109_v11, %v3860_v12  ;;  %v4540_v12 = vld [vmem:[%s6338_s8 + $0xc] ss:$28 sps:$4 sm:$0xff]   ;;  %v4544_v11 = vld [vmem:[%s6338_s8 + $0x40] ss:$28 sps:$4 sm:$0xff]   ;;  %v4550_v17 = vld [vmem:[%s6338_s8 + $0x78] ss:$28 sps:$4 sm:$0xff]  }
 0x280   :  { %v4558_v18 = vld [vmem:[%s6338_s8 + $0xb4] ss:$28 sps:$4 sm:$0xff]  }
 0x281   :  { %v5671_v21 = vadd.f32 %v1886_v10, %v1847_v20  ;;  %v4532_v10 = vld [vmem:[%s6336_s6 + $0x68] ss:$16 sps:$4 sm:$0xff]   ;;  %v4556_v19 = vld [vmem:[%s6338_s8 + $0xb0] ss:$28 sps:$4 sm:$0xff]  }
 0x282   :  { %v4564_v20 = vld [vmem:[%s6338_s8 + $0xec] ss:$28 sps:$4 sm:$0xff]  }
 0x283   :  { %v1893_v22 = vmul.f32 0.5, %v5671_v21  ;;  %3626 = vst [vmem:[#allocation4] sm:$0xff] %v5671_v21 }
 0x285   :  { %v1894_v24 = vmul.f32 1.442695, %v1893_v22  ;;  %v4570_v22 = vld [vmem:[%s6338_s8 + $0x124] ss:$28 sps:$4 sm:$0xff]  }
 0x287   :  { %4785 = vpow2.f32 %v1894_v24  ;;  %v4576_v24 = vld [vmem:[%s6338_s8 + $0x15c] ss:$28 sps:$4 sm:$0xff]  }
 0x291   :  { %v4786_v27 = vpop.eup %4785 }
 0x292   :  { %1897 = vrot.lane.b32.xlu0 %v4786_v27, %s4864_s23  ;;  %v4580_v27 = vld [vmem:[%s6338_s8 + $0x190] ss:$28 sps:$4 sm:$0xff]  }
 0x304   :  { %v1898_v0 = vpop.permute.xlu0 %1897 }
 0x305   :  { %v1900_v1 = vmul.f32 %v1898_v0, %v1892_v63  ;;  %v4631_v63 = vld [vmem:[%s6338_s8 + $0x380] ss:$28 sps:$4 sm:$0xff]   ;;  %v4634_v0 = vld [vmem:[%s6338_s8 + $0x388] ss:$28 sps:$4 sm:$0xff]  }
 0x307   :  { %v1901_v2 = vadd.f32 %v1900_v1, %v5671_v21  ;;  %v4562_v21 = vld [vmem:[%s6338_s8 + $0xe8] ss:$28 sps:$4 sm:$0xff]  }
 0x309   :  { %v1902_v4 = vpack.c.bf16 %v1901_v2, %v1901_v2  ;;  %v4639_v2 = vld [vmem:[%s6338_s8 + $0x3bc] ss:$28 sps:$4 sm:$0xff]  }
 0x30b   :  { %3903 = vmatmul.mubr.msk.bf16.vlgmr.msra.gmra.mrb[8].mxu1 %vm2021_vm1, %v1902_v4 }
 0x30c   :  { %2067 = vmatpush1.bf16.msra.mxu1 %v4523_v3  ;;  %2098 = vmatprep.mubr.bf16.mxu1 %v4863_v15  ;;  %v4642_v3 = vld [vmem:[%s6338_s8 + $0x3c4] ss:$28 sps:$4 sm:$0xff]  }
 0x30d   :  { %2068 = vmatprep.subr.bf16.mxu1 %v4528_v5  ;;  %v4640_v5 = vld [vmem:[%s6338_s8 + $0x3c0] ss:$28 sps:$4 sm:$0xff]  }
 0x310   :  { %2069 = vmatpush1.bf16.msra.mxu1 %v4526_v6  ;;  %v4645_v6 = vld [vmem:[%s6338_s8 + $0x3f4] ss:$28 sps:$4 sm:$0xff]  }
 0x311   :  { %2070 = vmatprep.subr.bf16.mxu1 %v4531_v7  ;;  %v4648_v7 = vld [vmem:[%s6338_s8 + $0x3fc] ss:$28 sps:$4 sm:$0xff]  }
 0x314   :  { %2071 = vmatpush1.bf16.msra.mxu1 %v4529_v8  ;;  %v4643_v8 = vld [vmem:[%s6338_s8 + $0x3f0] ss:$28 sps:$4 sm:$0xff]  }
 0x315   :  { %2072 = vmatprep.subr.bf16.mxu1 %v4534_v9  ;;  %v4646_v9 = vld [vmem:[%s6338_s8 + $0x3f8] ss:$28 sps:$4 sm:$0xff]  }
 0x318   :  { %2073 = vmatpush1.bf16.msra.mxu1 %v4532_v10  ;;  %v4651_v10 = vld [vmem:[%s6338_s8 + $0x42c] ss:$28 sps:$4 sm:$0xff]  }
 0x319   :  { %3333 = vmatprep.subr.bf16.mxu1 %v4540_v12  ;;  %v4654_v12 = vld [vmem:[%s6338_s8 + $0x434] ss:$28 sps:$4 sm:$0xff]  }
 0x31b   :  { %3904 = vmatmul.mubr.msk.bf16.vlgmr.msra.gmra.mrb[12].mxu1 %vm2021_vm1, %v1902_v4  ;;  %v4637_v4 = vld [vmem:[%s6338_s8 + $0x3b8] ss:$28 sps:$4 sm:$0xff]  }
 0x31c   :  { %3334 = vmatpush1.bf16.msra.mxu1 %v4538_v13  ;;  %v1936_v13 = vrot.slane %v5913_v53, %v5642_v46 }
 0x31d   :  { %3335 = vmatprep.subr.bf16.mxu1 %v4546_v14 }
 0x320   :  { %3336 = vmatpush1.bf16.msra.mxu1 %v4544_v11  ;;  %v4649_v11 = vld [vmem:[%s6338_s8 + $0x428] ss:$28 sps:$4 sm:$0xff]  }
 0x321   :  { %3337 = vmatprep.subr.bf16.mxu1 %v4552_v16  ;;  %v4652_v16 = vld [vmem:[%s6338_s8 + $0x430] ss:$28 sps:$4 sm:$0xff]  }
 0x324   :  { %3338 = vmatpush1.bf16.msra.mxu1 %v4550_v17 }
 0x325   :  { %3339 = vmatprep.subr.bf16.mxu1 %v4558_v18  ;;  %v4657_v18 = vld [vmem:[%s6338_s8 + $0x464] ss:$28 sps:$4 sm:$0xff]  }
 0x328   :  { %3340 = vmatpush1.bf16.msra.mxu1 %v4556_v19  ;;  %v4660_v19 = vld [vmem:[%s6338_s8 + $0x46c] ss:$28 sps:$4 sm:$0xff]  }
 0x329   :  { %3341 = vmatprep.subr.bf16.mxu1 %v4564_v20 }
 0x32c   :  { %3342 = vmatpush1.bf16.msra.mxu1 %v4562_v21 }
 0x32d   :  { %3343 = vmatprep.subr.bf16.mxu1 %v4570_v22 }
 0x330   :  { %3344 = vmatpush1.bf16.msra.mxu1 %v4568_v23 }
 0x331   :  { %3345 = vmatprep.subr.bf16.mxu1 %v4576_v24  ;;  %v4655_v24 = vld [vmem:[%s6338_s8 + $0x460] ss:$28 sps:$4 sm:$0xff]  }
 0x334   :  { %3346 = vmatpush1.bf16.msra.mxu1 %v4574_v25  ;;  %v4658_v25 = vld [vmem:[%s6338_s8 + $0x468] ss:$28 sps:$4 sm:$0xff]  }
 0x335   :  { %3347 = vmatprep.subr.bf16.mxu1 %v4582_v26  ;;  %v4663_v26 = vld [vmem:[%s6338_s8 + $0x49c] ss:$28 sps:$4 sm:$0xff]  }
 0x338   :  { %3348 = vmatpush1.bf16.msra.mxu1 %v4580_v27  ;;  %v4666_v27 = vld [vmem:[%s6338_s8 + $0x4a4] ss:$28 sps:$4 sm:$0xff]  }
 0x339   :  { %3349 = vmatprep.subr.bf16.mxu1 %v4588_v28  ;;  %v4661_v28 = vld [vmem:[%s6338_s8 + $0x498] ss:$28 sps:$4 sm:$0xff]  }
 0x33c   :  { %3350 = vmatpush1.bf16.msra.mxu1 %v4586_v29  ;;  %v4664_v29 = vld [vmem:[%s6338_s8 + $0x4a0] ss:$28 sps:$4 sm:$0xff]  }
 0x33d   :  { %3351 = vmatprep.subr.bf16.mxu1 %v4594_v30  ;;  %v4669_v30 = vld [vmem:[%s6338_s8 + $0x4d4] ss:$28 sps:$4 sm:$0xff]  }
 0x340   :  { %3352 = vmatpush1.bf16.msra.mxu1 %v4592_v31  ;;  %v4672_v31 = vld [vmem:[%s6338_s8 + $0x4dc] ss:$28 sps:$4 sm:$0xff]  }
 0x341   :  { %3353 = vmatprep.subr.bf16.mxu1 %v4600_v32  ;;  %v4667_v32 = vld [vmem:[%s6338_s8 + $0x4d0] ss:$28 sps:$4 sm:$0xff]  }
 0x344   :  { %3354 = vmatpush1.bf16.msra.mxu1 %v4598_v33  ;;  %v4670_v33 = vld [vmem:[%s6338_s8 + $0x4d8] ss:$28 sps:$4 sm:$0xff]  }
 0x345   :  { %3355 = vmatprep.subr.bf16.mxu1 %v4606_v34  ;;  %v4675_v34 = vld [vmem:[%s6338_s8 + $0x50c] ss:$28 sps:$4 sm:$0xff]  }
 0x348   :  { %3356 = vmatpush1.bf16.msra.mxu1 %v4604_v35  ;;  %v4678_v35 = vld [vmem:[%s6338_s8 + $0x514] ss:$28 sps:$4 sm:$0xff]  }
 0x349   :  { %3357 = vmatprep.subr.bf16.mxu1 %v4612_v36  ;;  %v4673_v36 = vld [vmem:[%s6338_s8 + $0x508] ss:$28 sps:$4 sm:$0xff]  }
 0x34c   :  { %3358 = vmatpush1.bf16.msra.mxu1 %v4610_v37  ;;  %v4676_v37 = vld [vmem:[%s6338_s8 + $0x510] ss:$28 sps:$4 sm:$0xff]  }
 0x34d   :  { %3359 = vmatprep.subr.bf16.mxu1 %v4618_v38  ;;  %v1932_v38 = vrot.slane %v5913_v53, %v5633_v43  ;;  %v4689_v53 = vld [vmem:[%s6338_s8 + $0x18] ss:$28 sps:$4 sm:$0xff]  }
 0x350   :  { %3360 = vmatpush1.bf16.msra.mxu1 %v4616_v39  ;;  %v4681_v39 = vld [vmem:[%s6338_s8 + $0x544] ss:$28 sps:$4 sm:$0xff]  }
 0x351   :  { %3361 = vmatprep.subr.bf16.mxu1 %v4624_v40  ;;  %v4684_v40 = vld [vmem:[%s6338_s8 + $0x54c] ss:$28 sps:$4 sm:$0xff]  }
 0x354   :  { %3362 = vmatpush1.bf16.msra.mxu1 %v4622_v44  ;;  %v4679_v44 = vld [vmem:[%s6338_s8 + $0x540] ss:$28 sps:$4 sm:$0xff]  }
 0x355   :  { %3363 = vmatprep.subr.bf16.mxu1 %v4630_v48 }
 0x358   :  { %3364 = vmatpush1.bf16.msra.mxu1 %v4628_v50  ;;  %v4688_v50 = vld [vmem:[%s6338_s8 + $0x1d8] ss:$28 sps:$4 sm:$0xff]  }
 0x359   :  { %3374 = vmatprep.subr.bf16.mxu1 %v4636_v52 }
 0x3de   :  { %v2059_v56 = vpop.f32.mrb[8].mxu1 }
 0x3df   :  { %v2060_v57 = vadd.f32 %v2059_v56, %v1924_v54  ;;  %v2061_v58 = vpop.f32.mrb[9].mxu1  ;;  %v4692_v54 = vld [vmem:[%s6338_s8 + $0x4c] ss:$28 sps:$4 sm:$0xff]  }
 0x3e0   :  { %v2062_v59 = vadd.f32 %v2061_v58, %v1928_v55  ;;  %v2063_v60 = vpop.f32.mrb[10].mxu1  ;;  %v4693_v55 = vld [vmem:[%s6338_s8 + $0x210] ss:$28 sps:$4 sm:$0xff]   ;;  %v4690_v56 = vld [vmem:[%s6338_s8 + $0x48] ss:$28 sps:$4 sm:$0xff]  }
 0x3e1   :  { %v2064_v61 = vpop.f32.mrb[11].mxu1  ;;  %v5927_v1 = vpack.c.bf16 %v2060_v57, %v2060_v57  ;;  %v4694_v57 = vld [vmem:[%s6338_s8 + $0x50] ss:$28 sps:$4 sm:$0xff]   ;;  %v4697_v58 = vld [vmem:[%s6338_s8 + $0x84] ss:$28 sps:$4 sm:$0xff]  }
 0x3e2   :  { %v5919_v62 = vpack.c.bf16 %v2062_v59, %v2062_v59  ;;  %v4698_v59 = vld [vmem:[%s6338_s8 + $0x248] ss:$28 sps:$4 sm:$0xff]   ;;  %v4695_v60 = vld [vmem:[%s6338_s8 + $0x80] ss:$28 sps:$4 sm:$0xff]  }
 0x3e3   :  { %v4699_v61 = vld [vmem:[%s6338_s8 + $0x88] ss:$28 sps:$4 sm:$0xff]  }
 0x3e4   :  { %3283 = vmatprep.mubr.bf16.mxu0 %v5919_v62  ;;  %3365 = vmatprep.mubr.bf16.mxu1 %v5919_v62 }
 0x3e5   :  { %3284 = vmatmul.mubr.bf16.vlgmr.msra.gmra.mrb[8].mxu0 %v5927_v1  ;;  %3366 = vmatmul.mubr.bf16.vlgmr.msra.gmra.mrb[16].mxu1 %v5927_v1 }
 0x3e6   :  { %3293 = vmatpush1.bf16.msra.mxu0 %v4631_v63  ;;  %3375 = vmatpush1.bf16.msra.mxu1 %v4634_v0  ;;  %v4703_v63 = vld [vmem:[%s6338_s8 + $0x280] ss:$28 sps:$4 sm:$0xff]   ;;  %v4700_v0 = vld [vmem:[%s6338_s8 + $0xb8] ss:$28 sps:$4 sm:$0xff]  }
 0x3e7   :  { %3294 = vmatprep.subr.bf16.mxu0 %v4639_v2  ;;  %3376 = vmatprep.subr.bf16.mxu1 %v4642_v3  ;;  %v4704_v2 = vld [vmem:[%s6338_s8 + $0xc0] ss:$28 sps:$4 sm:$0xff]   ;;  %v4707_v3 = vld [vmem:[%s6338_s8 + $0xf4] ss:$28 sps:$4 sm:$0xff]  }
 0x3ea   :  { %3295 = vmatpush1.bf16.msra.mxu0 %v4637_v4  ;;  %3377 = vmatpush1.bf16.msra.mxu1 %v4640_v5  ;;  %v4708_v4 = vld [vmem:[%s6338_s8 + $0x2b8] ss:$28 sps:$4 sm:$0xff]   ;;  %v4705_v5 = vld [vmem:[%s6338_s8 + $0xf0] ss:$28 sps:$4 sm:$0xff]  }
 0x3eb   :  { %3296 = vmatprep.subr.bf16.mxu0 %v4645_v6  ;;  %3378 = vmatprep.subr.bf16.mxu1 %v4648_v7  ;;  %v4709_v6 = vld [vmem:[%s6338_s8 + $0xf8] ss:$28 sps:$4 sm:$0xff]   ;;  %v4712_v7 = vld [vmem:[%s6338_s8 + $0x12c] ss:$28 sps:$4 sm:$0xff]  }
 0x3ee   :  { %v2100_v14 = vpop.f32.mrb[12].mxu1  ;;  %3297 = vmatpush1.bf16.msra.mxu0 %v4643_v8  ;;  %3379 = vmatpush1.bf16.msra.mxu1 %v4646_v9  ;;  %v4713_v8 = vld [vmem:[%s6338_s8 + $0x2f0] ss:$28 sps:$4 sm:$0xff]   ;;  %v4710_v9 = vld [vmem:[%s6338_s8 + $0x128] ss:$28 sps:$4 sm:$0xff]  }
 0x3ef   :  { %v2102_v17 = vpop.f32.mrb[13].mxu1  ;;  %3298 = vmatprep.subr.bf16.mxu0 %v4651_v10  ;;  %3380 = vmatprep.subr.bf16.mxu1 %v4654_v12  ;;  %v2101_v48 = vadd.f32 %v2100_v14, %v1932_v38  ;;  %v4714_v10 = vld [vmem:[%s6338_s8 + $0x130] ss:$28 sps:$4 sm:$0xff]   ;;  %v4717_v12 = vld [vmem:[%s6338_s8 + $0x164] ss:$28 sps:$4 sm:$0xff]  }
 0x3f0   :  { %v2103_v20 = vadd.f32 %v2102_v17, %v1936_v13  ;;  %v2104_v21 = vpop.f32.mrb[14].mxu1  ;;  %v4718_v13 = vld [vmem:[%s6338_s8 + $0x328] ss:$28 sps:$4 sm:$0xff]   ;;  %v4715_v14 = vld [vmem:[%s6338_s8 + $0x160] ss:$28 sps:$4 sm:$0xff]  }
 0x3f1   :  { %v2105_v22 = vpop.f32.mrb[15].mxu1  ;;  %v6048_v52 = vpack.c.bf16 %v2101_v48, %v2101_v48  ;;  %v4723_v17 = vld [vmem:[%s6338_s8 + $0x360] ss:$28 sps:$4 sm:$0xff]   ;;  %v4725_v21 = vld [vmem:[%s6338_s8 + $0x1d0] ss:$28 sps:$4 sm:$0xff]  }
 0x3f2   :  { %v5977_v23 = vpack.c.bf16 %v2103_v20, %v2103_v20  ;;  %3299 = vmatpush1.bf16.msra.mxu0 %v4649_v11  ;;  %3381 = vmatpush1.bf16.msra.mxu1 %v4652_v16  ;;  %v4719_v11 = vld [vmem:[%s6338_s8 + $0x168] ss:$28 sps:$4 sm:$0xff]   ;;  %v4722_v16 = vld [vmem:[%s6338_s8 + $0x19c] ss:$28 sps:$4 sm:$0xff]   ;;  %v4727_v20 = vld [vmem:[%s6338_s8 + $0x1d4] ss:$28 sps:$4 sm:$0xff]  }
 0x3f3   :  { %3300 = vmatprep.subr.bf16.mxu0 %v4657_v18  ;;  %3382 = vmatprep.subr.bf16.mxu1 %v4660_v19  ;;  %v4720_v18 = vld [vmem:[%s6338_s8 + $0x198] ss:$28 sps:$4 sm:$0xff]   ;;  %v4724_v19 = vld [vmem:[%s6338_s8 + $0x1a0] ss:$28 sps:$4 sm:$0xff]   ;;  %v4748_v38 = vld [vmem:[%s6338_s8 + $0x4b0] ss:$28 sps:$4 sm:$0xff]  }
 0x3f4   :  { %4080 = vmatprep.mubr.msk.bf16.mxu0 %vm1266_vm0, %v5977_v23  ;;  %4081 = vmatprep.mubr.msk.bf16.mxu1 %vm1266_vm0, %v5977_v23  ;;  %v4728_v22 = vld [vmem:[%s6338_s8 + $0x398] ss:$28 sps:$4 sm:$0xff]  }
 0x3f5   :  { %v4753_v48 = vld [vmem:[%s6338_s8 + $0x358] ss:$28 sps:$4 sm:$0xff]  }
 0x3f6   :  { %3301 = vmatpush1.bf16.msra.mxu0 %v4655_v24  ;;  %3383 = vmatpush1.bf16.msra.mxu1 %v4658_v25  ;;  %v4731_v24 = vld [vmem:[%s6338_s8 + $0x20c] ss:$28 sps:$4 sm:$0xff]  }
 0x3f7   :  { %3302 = vmatprep.subr.bf16.mxu0 %v4663_v26  ;;  %3384 = vmatprep.subr.bf16.mxu1 %v4666_v27  ;;  %v4729_v25 = vld [vmem:[%s6338_s8 + $0x208] ss:$28 sps:$4 sm:$0xff]   ;;  %v4732_v26 = vld [vmem:[%s6338_s8 + $0x3d0] ss:$28 sps:$4 sm:$0xff]  }
 0x3f8   :  { %v4735_v27 = vld [vmem:[%s6338_s8 + $0x244] ss:$28 sps:$4 sm:$0xff]  }
 0x3fa   :  { %3303 = vmatpush1.bf16.msra.mxu0 %v4661_v28  ;;  %3385 = vmatpush1.bf16.msra.mxu1 %v4664_v29  ;;  %v4733_v28 = vld [vmem:[%s6338_s8 + $0x240] ss:$28 sps:$4 sm:$0xff]   ;;  %v4736_v29 = vld [vmem:[%s6338_s8 + $0x408] ss:$28 sps:$4 sm:$0xff]  }
 0x3fb   :  { %3304 = vmatprep.subr.bf16.mxu0 %v4669_v30  ;;  %3386 = vmatprep.subr.bf16.mxu1 %v4672_v31  ;;  %v4739_v30 = vld [vmem:[%s6338_s8 + $0x27c] ss:$28 sps:$4 sm:$0xff]  }
 0x3fc   :  { %v4737_v31 = vld [vmem:[%s6338_s8 + $0x278] ss:$28 sps:$4 sm:$0xff]  }
 0x3fe   :  { %3305 = vmatpush1.bf16.msra.mxu0 %v4667_v32  ;;  %3387 = vmatpush1.bf16.msra.mxu1 %v4670_v33  ;;  %v4740_v32 = vld [vmem:[%s6338_s8 + $0x440] ss:$28 sps:$4 sm:$0xff]   ;;  %v4743_v33 = vld [vmem:[%s6338_s8 + $0x2b4] ss:$28 sps:$4 sm:$0xff]  }
 0x3ff   :  { %3306 = vmatprep.subr.bf16.mxu0 %v4675_v34  ;;  %3388 = vmatprep.subr.bf16.mxu1 %v4678_v35  ;;  %v4741_v34 = vld [vmem:[%s6338_s8 + $0x2b0] ss:$28 sps:$4 sm:$0xff]   ;;  %v4744_v35 = vld [vmem:[%s6338_s8 + $0x478] ss:$28 sps:$4 sm:$0xff]  }
 0x402   :  { %3307 = vmatpush1.bf16.msra.mxu0 %v4673_v36  ;;  %3389 = vmatpush1.bf16.msra.mxu1 %v4676_v37  ;;  %v4747_v36 = vld [vmem:[%s6338_s8 + $0x2ec] ss:$28 sps:$4 sm:$0xff]  }
 0x403   :  { %3308 = vmatprep.subr.bf16.mxu0 %v4681_v39  ;;  %3390 = vmatprep.subr.bf16.mxu1 %v4684_v40  ;;  %v4745_v37 = vld [vmem:[%s6338_s8 + $0x2e8] ss:$28 sps:$4 sm:$0xff]   ;;  %v4749_v40 = vld [vmem:[%s6338_s8 + $0x320] ss:$28 sps:$4 sm:$0xff]  }
 0x404   :  { %v4751_v39 = vld [vmem:[%s6338_s8 + $0x324] ss:$28 sps:$4 sm:$0xff]  }
 0x406   :  { %3309 = vmatpush1.bf16.msra.mxu0 %v4679_v44  ;;  %3391 = vmatpush1.bf16.msra.mxu1 %v4682_v47  ;;  %v4752_v44 = vld [vmem:[%s6338_s8 + $0x4e8] ss:$28 sps:$4 sm:$0xff]   ;;  %v4755_v47 = vld [vmem:[%s6338_s8 + $0x35c] ss:$28 sps:$4 sm:$0xff]  }
 0x407   :  { %3415 = vmatprep.subr.bf16.mxu0 %v4687_v49  ;;  %4113 = vmatprep.subr.bf16.mxu1 %v4688_v50  ;;  %v4756_v49 = vld [vmem:[%s6338_s8 + $0x520] ss:$28 sps:$4 sm:$0xff]   ;;  %v4759_v50 = vld [vmem:[%s6338_s8 + $0x394] ss:$28 sps:$4 sm:$0xff]  }
 0x409   :  { %3325 = vmatmul.mubr.bf16.vlgmr.msra.gmra.mrb[8].mxu0 %v6048_v52  ;;  %3407 = vmatmul.mubr.bf16.vlgmr.msra.gmra.mrb[16].mxu1 %v6048_v52 }
 0x40a   :  { %3416 = vmatpush1.bf16.msra.mxu0 %v4685_v51  ;;  %3447 = vmatprep.mubr.bf16.mxu0 %v5919_v62  ;;  %v4757_v51 = vld [vmem:[%s6338_s8 + $0x390] ss:$28 sps:$4 sm:$0xff]  }
 0x40b   :  { %4114 = vmatpush3.bf16.msra.mxu1 %v4689_v53  ;;  %3529 = vmatprep.mubr.bf16.mxu1 %v5919_v62  ;;  %v4702_v62 = vld [vmem:[%s6338_s8 + $0xbc] ss:$28 sps:$4 sm:$0xff]  }
 0x40c   :  { %3417 = vmatprep.subr.bf16.mxu0 %v4692_v54  ;;  %4115 = vmatprep.subr.bf16.mxu1 %v4693_v55  ;;  %v4760_v53 = vld [vmem:[%s6338_s8 + $0x558] ss:$28 sps:$4 sm:$0xff]   ;;  %v4763_v54 = vld [vmem:[%s6338_s8 + $0x3cc] ss:$28 sps:$4 sm:$0xff]  }
 0x40d   :  { %v4761_v55 = vld [vmem:[%s6338_s8 + $0x3c8] ss:$28 sps:$4 sm:$0xff]  }
 0x40e   :  { %3418 = vmatpush1.bf16.msra.mxu0 %v4690_v56  ;;  %v4766_v56 = vld [vmem:[%s6338_s8 + $0x404] ss:$28 sps:$4 sm:$0xff]  }
 0x40f   :  { %4116 = vmatpush3.bf16.msra.mxu1 %v4694_v57  ;;  %3419 = vmatprep.subr.bf16.mxu0 %v4697_v58  ;;  %v4772_v57 = vld [vmem:[%s6338_s8 + $0x474] ss:$28 sps:$4 sm:$0xff]  }
 0x410   :  { %4117 = vmatprep.subr.bf16.mxu1 %v4698_v59  ;;  %v4770_v58 = vld [vmem:[%s6338_s8 + $0x470] ss:$28 sps:$4 sm:$0xff]  }
 0x411   :  { %v4775_v59 = vld [vmem:[%s6338_s8 + $0x4ac] ss:$28 sps:$4 sm:$0xff]  }
 0x412   :  { %3420 = vmatpush1.bf16.msra.mxu0 %v4695_v60  ;;  %v4773_v60 = vld [vmem:[%s6338_s8 + $0x4a8] ss:$28 sps:$4 sm:$0xff]  }
 0x413   :  { %4118 = vmatpush3.bf16.msra.mxu1 %v4699_v61  ;;  %3421 = vmatprep.subr.bf16.mxu0 %v4702_v62  ;;  %v4778_v61 = vld [vmem:[%s6338_s8 + $0x4e4] ss:$28 sps:$4 sm:$0xff]  }
 0x414   :  { %4119 = vmatprep.subr.bf16.mxu1 %v4703_v63  ;;  %v4776_v62 = vld [vmem:[%s6338_s8 + $0x4e0] ss:$28 sps:$4 sm:$0xff]  }
 0x415   :  { %v4781_v63 = vld [vmem:[%s6338_s8 + $0x51c] ss:$28 sps:$4 sm:$0xff]  }
 0x416   :  { %3422 = vmatpush1.bf16.msra.mxu0 %v4700_v0  ;;  %v4779_v0 = vld [vmem:[%s6338_s8 + $0x518] ss:$28 sps:$4 sm:$0xff]  }
 0x417   :  { %4120 = vmatpush3.bf16.msra.mxu1 %v4704_v2  ;;  %3423 = vmatprep.subr.bf16.mxu0 %v4707_v3  ;;  %v4784_v2 = vld [vmem:[%s6338_s8 + $0x554] ss:$28 sps:$4 sm:$0xff]  }
 0x418   :  { %4121 = vmatprep.subr.bf16.mxu1 %v4708_v4  ;;  %v4782_v3 = vld [vmem:[%s6338_s8 + $0x550] ss:$28 sps:$4 sm:$0xff]   ;;  %v6290_v4 = vld [vmem:[%s6339_s9] sm:$0xff] }
 0x41a   :  { %3424 = vmatpush1.bf16.msra.mxu0 %v4705_v5  ;;  %v2316_v5 = vrot.slane %v6290_v4, %v5630_v42 }
 0x41b   :  { %4122 = vmatpush3.bf16.msra.mxu1 %v4709_v6  ;;  %3425 = vmatprep.subr.bf16.mxu0 %v4712_v7  ;;  %v2324_v6 = vrot.slane %v6290_v4, %v5633_v43  ;;  %v2320_v7 = vrot.slane %v6290_v4, %v5639_v45 }
 0x41c   :  { %4123 = vmatprep.subr.bf16.mxu1 %v4713_v8  ;;  %v2328_v8 = vrot.slane %v6290_v4, %v5642_v46 }
 0x41e   :  { %3426 = vmatpush1.bf16.msra.mxu0 %v4710_v9 }
 0x41f   :  { %4124 = vmatpush3.bf16.msra.mxu1 %v4714_v10  ;;  %3427 = vmatprep.subr.bf16.mxu0 %v4717_v12 }
 0x420   :  { %4125 = vmatprep.subr.bf16.mxu1 %v4718_v13 }
 0x422   :  { %3428 = vmatpush1.bf16.msra.mxu0 %v4715_v14 }
 0x423   :  { %4126 = vmatpush3.bf16.msra.mxu1 %v4719_v11  ;;  %3429 = vmatprep.subr.bf16.mxu0 %v4722_v16 }
 0x424   :  { %4127 = vmatprep.subr.bf16.mxu1 %v4723_v17 }
 0x426   :  { %3430 = vmatpush1.bf16.msra.mxu0 %v4720_v18 }
 0x427   :  { %4128 = vmatpush3.bf16.msra.mxu1 %v4724_v19  ;;  %3431 = vmatprep.subr.bf16.mxu0 %v4727_v20 }
 0x428   :  { %3537 = vmatprep.subr.bf16.mxu1 %v4863_v15 }
 0x42a   :  { %3530 = vmatmul.mubr.bf16.vlgmr.msra.gmra.mrb[20].mxu1 %v5927_v1  ;;  %3432 = vmatpush1.bf16.msra.mxu0 %v4725_v21 }
 0x42b   :  { %3538 = vmatpush1.bf16.msra.mxu1 %v4728_v22  ;;  %4083 = vmatprep.mubr.msk.bf16.mxu1 %vm1266_vm0, %v5977_v23 }
 0x42c   :  { %3433 = vmatprep.subr.bf16.mxu0 %v4731_v24  ;;  %3539 = vmatprep.subr.bf16.mxu1 %v4863_v15 }
 0x42e   :  { %3434 = vmatpush1.bf16.msra.mxu0 %v4729_v25 }
 0x42f   :  { %3540 = vmatpush1.bf16.msra.mxu1 %v4732_v26  ;;  %3435 = vmatprep.subr.bf16.mxu0 %v4735_v27 }
 0x430   :  { %3541 = vmatprep.subr.bf16.mxu1 %v4863_v15 }
 0x432   :  { %3436 = vmatpush1.bf16.msra.mxu0 %v4733_v28 }
 0x433   :  { %3542 = vmatpush1.bf16.msra.mxu1 %v4736_v29  ;;  %3437 = vmatprep.subr.bf16.mxu0 %v4739_v30 }
 0x434   :  { %3543 = vmatprep.subr.bf16.mxu1 %v4863_v15 }
 0x436   :  { %3438 = vmatpush1.bf16.msra.mxu0 %v4737_v31 }
 0x437   :  { %3544 = vmatpush1.bf16.msra.mxu1 %v4740_v32  ;;  %3439 = vmatprep.subr.bf16.mxu0 %v4743_v33 }
 0x438   :  { %3545 = vmatprep.subr.bf16.mxu1 %v4863_v15 }
 0x43a   :  { %3440 = vmatpush1.bf16.msra.mxu0 %v4741_v34 }
 0x43b   :  { %3546 = vmatpush1.bf16.msra.mxu1 %v4744_v35  ;;  %3441 = vmatprep.subr.bf16.mxu0 %v4747_v36 }
 0x43c   :  { %3547 = vmatprep.subr.bf16.mxu1 %v4863_v15 }
 0x43e   :  { %3442 = vmatpush1.bf16.msra.mxu0 %v4745_v37 }
 0x43f   :  { %3548 = vmatpush1.bf16.msra.mxu1 %v4748_v38  ;;  %3443 = vmatprep.subr.bf16.mxu0 %v4751_v39 }
 0x440   :  { %3549 = vmatprep.subr.bf16.mxu1 %v4863_v15 }
 0x442   :  { %3444 = vmatpush1.bf16.msra.mxu0 %v4749_v40 }
 0x443   :  { %3550 = vmatpush1.bf16.msra.mxu1 %v4752_v44  ;;  %3445 = vmatprep.subr.bf16.mxu0 %v4755_v47 }
 0x444   :  { %3551 = vmatprep.subr.bf16.mxu1 %v4863_v15 }
 0x446   :  { %3446 = vmatpush1.bf16.msra.mxu0 %v4753_v48 }
 0x447   :  { %3552 = vmatpush1.bf16.msra.mxu1 %v4756_v49  ;;  %3456 = vmatprep.subr.bf16.mxu0 %v4759_v50 }
 0x448   :  { %3553 = vmatprep.subr.bf16.mxu1 %v4863_v15  ;;  %v4764_v15 = vld [vmem:[%s6338_s8 + $0x400] ss:$28 sps:$4 sm:$0xff]  }
 0x449   :  { %3448 = vmatmul.mubr.bf16.vlgmr.msra.gmra.mrb[12].mxu0 %v5927_v1  ;;  %v4769_v1 = vld [vmem:[%s6338_s8 + $0x43c] ss:$28 sps:$4 sm:$0xff]  }
 0x44a   :  { %3457 = vmatpush1.bf16.msra.mxu0 %v4757_v51  ;;  %4082 = vmatprep.mubr.msk.bf16.mxu0 %vm1266_vm0, %v5977_v23  ;;  %v4767_v23 = vld [vmem:[%s6338_s8 + $0x438] ss:$28 sps:$4 sm:$0xff]   ;;  %s4865_s8 = smov [#allocation4]  }
 0x44b   :  { %3554 = vmatpush1.bf16.msra.mxu1 %v4760_v53  ;;  %3458 = vmatprep.subr.bf16.mxu0 %v4763_v54  ;;  %s3643_s9 = sshll.u32 %s4865_s8, 4  ;;  %s3644_s9 = int_to_ptr.vmem [resolvable:$true] %s3643_s9 }
 0x44c   :  { %s4815_s26 = scalar_lea.vmem %s3644_s9, 128  ;;  %p4820_p1 = scmp.lt.s32.totalorder %s3644_s9, %s3644_s9 }
 0x44d   :  { %p4816_p0 = scmp.ne.s32.totalorder %s3644_s9, %s4815_s26  ;;  %p4821_p2 = scmp.lt.s32.totalorder %s4815_s26, %s4815_s26 }
 0x44e   :  { %3570 = vmatmul.mubr.bf16.vlgmr.msra.gmra.mrb[24].mxu1 %v6048_v52  ;;  %3459 = vmatpush1.bf16.msra.mxu0 %v4761_v55 }
 0x44f   :  { %3460 = vmatprep.subr.bf16.mxu0 %v4766_v56  ;;  %p4822_p3 = por %p4821_p2, %p4820_p1 }
 0x451   :  { %p4823_p4 = pnand %p4822_p3, %p4816_p0 }
 0x452   :  { %3461 = vmatpush1.bf16.msra.mxu0 %v4764_v15 }
 0x453   :  { %3462 = vmatprep.subr.bf16.mxu0 %v4769_v1 }
 0x456   :  { %3463 = vmatpush1.bf16.msra.mxu0 %v4767_v23 }
 0x457   :  { %3464 = vmatprep.subr.bf16.mxu0 %v4772_v57 }
 0x45a   :  { %3465 = vmatpush1.bf16.msra.mxu0 %v4770_v58 }
 0x45b   :  { %3466 = vmatprep.subr.bf16.mxu0 %v4775_v59 }
 0x45e   :  { %3467 = vmatpush1.bf16.msra.mxu0 %v4773_v60 }
 0x45f   :  { %3468 = vmatprep.subr.bf16.mxu0 %v4778_v61 }
 0x462   :  { %3469 = vmatpush1.bf16.msra.mxu0 %v4776_v62 }
 0x463   :  { %3470 = vmatprep.subr.bf16.mxu0 %v4781_v63 }
 0x466   :  { %3471 = vmatpush1.bf16.msra.mxu0 %v4779_v0 }
 0x467   :  { %3472 = vmatprep.subr.bf16.mxu0 %v4784_v2 }
 0x46a   :  { %3473 = vmatpush1.bf16.msra.mxu0 %v4782_v3 }
 0x46d   :  { %3489 = vmatmul.mubr.bf16.vlgmr.msra.gmra.mrb[12].mxu0 %v6048_v52 }
 0x4dc   :  { %v3326_v9 = vpop.f32.mrb[8].mxu0  ;;  %v3408_v10 = vpop.f32.mrb[16].mxu1 }
 0x4dd   :  { %v4139_v52 = vadd.f32 %v3326_v9, %v2316_v5  ;;  %v4141_v12 = vadd.f32 %v3408_v10, %v2324_v6  ;;  %v3328_v13 = vpop.f32.mrb[9].mxu0  ;;  %v3410_v14 = vpop.f32.mrb[17].mxu1 }
 0x4de   :  { %v4140_v11 = vadd.f32 %v3328_v13, %v2320_v7  ;;  %v4142_v16 = vadd.f32 %v3410_v14, %v2328_v8  ;;  %v3330_v17 = vpop.f32.mrb[10].mxu0  ;;  %v3412_v18 = vpop.f32.mrb[18].mxu1 }
 0x4df   :  { %v4084_v42 = vmul.f32 -1.442695, %v4139_v52  ;;  %v4086_v19 = vmul.f32 -1.442695, %v4141_v12  ;;  %v3331_v20 = vpop.f32.mrb[11].mxu0  ;;  %v3413_v43 = vpop.f32.mrb[19].mxu1 }
 0x4e0   :  { %v4085_v21 = vmul.f32 -1.442695, %v4140_v11  ;;  %v4087_v22 = vmul.f32 -1.442695, %v4142_v16 }
 0x4e1   :  { %4787 = vpow2.f32 %v4084_v42 }
 0x4e2   :  { %4789 = vpow2.f32 %v4086_v19 }
 0x4e3   :  { %4826 = shalt.err (!%p4823_p4)
}
 0x4e4   :  { %s4827_s27 = scalar_lea.hbm %s6341_s11, 128 }
 0x4e5   :  { %p4828_p5 = scmp.ne.s32.totalorder %s6341_s11, %s4827_s27  ;;  %p4831_p6 = scmp.lt.u32.totalorder %s4827_s27, %s6341_s11 }
 0x4e7   :  { %p4833_p7 = pnand %p4831_p6, %p4828_p5 }
 0x4e9   :  { %4836 = shalt.err (!%p4833_p7)
}
 0x4ea   :  { %3646 = dma.vmem_to_hbm [thread:$0]  %s3644_s9, 128, %s6341_s11, [#allocation5]   ;;  %4791 = vpow2.f32 %v4085_v21  ;;  %v2339_v39 = vsub.s32 6, %v5627_v41  ;;  %v2331_v56 = vsub.s32 4, %v5627_v41  ;;  %v2335_v15 = vsub.s32 5, %v5627_v41 }
 0x4eb   :  { %4793 = vpow2.f32 %v4087_v22  ;;  %v4788_v45 = vpop.eup %4787  ;;  %s4866_s11 = smov [#allocation2]  }
 0x4ec   :  { %v4790_v46 = vpop.eup %4789  ;;  %v3598_v24 = vadd.f32 1.0, %v4788_v45  ;;  %v2340_v40 = vrot.slane %v6290_v4, %v2339_v39  ;;  %v2332_v23 = vrot.slane %v6290_v4, %v2331_v56  ;;  %v2336_v57 = vrot.slane %v6290_v4, %v2335_v15  ;;  %s3633_s13 = sshll.u32 %s4866_s11, 4  ;;  %s3634_s13 = int_to_ptr.vmem [resolvable:$true] %s3633_s13 }
 0x4ed   :  { %v3600_v26 = vadd.f32 1.0, %v4790_v46  ;;  %s4837_s14 = scalar_lea.vmem %s3634_s13, 896  ;;  %p4842_p9 = scmp.lt.s32.totalorder %s3634_s13, %s3634_s13 }
 0x4ee   :  { %4795 = vrcp.f32 %v3598_v24  ;;  %p4838_p8 = scmp.ne.s32.totalorder %s3634_s13, %s4837_s14  ;;  %p4843_p10 = scmp.lt.s32.totalorder %s4837_s14, %s4837_s14 }
 0x4ef   :  { %4797 = vrcp.f32 %v3600_v26 }
 0x4f0   :  { %p4844_p11 = por %p4843_p10, %p4842_p9 }
 0x4f2   :  { %p4845_p12 = pnand %p4844_p11, %p4838_p8 }
 0x4f4   :  { %v4792_v25 = vpop.eup %4791 }
 0x4f5   :  { %v4794_v27 = vpop.eup %4793  ;;  %v3599_v28 = vadd.f32 1.0, %v4792_v25 }
 0x4f6   :  { %v3601_v29 = vadd.f32 1.0, %v4794_v27 }
 0x4f7   :  { %4799 = vrcp.f32 %v3599_v28 }
 0x4f8   :  { %4801 = vrcp.f32 %v3601_v29  ;;  %v4796_v30 = vpop.eup %4795 }
 0x4f9   :  { %v4798_v31 = vpop.eup %4797  ;;  %3619 = vst [vmem:[#allocation2] sm:$0xff] %v4796_v30 }
 0x4fa   :  { %3621 = vst [vmem:[#allocation2 + $0x10] sm:$0xff] %v4798_v31 }
 0x4fd   :  { %v4129_v34 = vpop.f32.mrb[20].mxu1 }
 0x4fe   :  { %v4130_v35 = vpop.f32.mrb[21].mxu1 }
 0x4ff   :  { %v4131_v36 = vadd.f32 %v4130_v35, %v4129_v34  ;;  %v4132_v37 = vpop.f32.mrb[22].mxu1 }
 0x500   :  { %v4133_v38 = vpop.f32.mrb[23].mxu1 }
 0x501   :  { %v4800_v32 = vpop.eup %4799  ;;  %v3532_v44 = vadd.f32 %v4131_v36, %v2340_v40 }
 0x502   :  { %v4802_v33 = vpop.eup %4801  ;;  %3620 = vst [vmem:[#allocation2 + $0x8] sm:$0xff] %v4800_v32 }
 0x503   :  { %3622 = vst [vmem:[#allocation2 + $0x18] sm:$0xff] %v4802_v33 }
 0x521   :  { %v3571_v47 = vpop.f32.mrb[24].mxu1 }
 0x522   :  { %v3572_v48 = vadd.f32 %v3571_v47, %v3532_v44  ;;  %v3573_v49 = vpop.f32.mrb[25].mxu1 }
 0x523   :  { %v3574_v50 = vpop.f32.mrb[26].mxu1 }
 0x524   :  { %v4090_v51 = vmul.f32 -1.442695, %v3572_v48  ;;  %v3575_v53 = vpop.f32.mrb[27].mxu1 }
 0x526   :  { %4803 = vpow2.f32 %v4090_v51 }
 0x530   :  { %v4804_v54 = vpop.eup %4803 }
 0x531   :  { %v3604_v55 = vadd.f32 1.0, %v4804_v54 }
 0x533   :  { %4805 = vrcp.f32 %v3604_v55 }
 0x53d   :  { %v4806_v1 = vpop.eup %4805 }
 0x53e   :  { %3625 = vst [vmem:[#allocation2 + $0x30] sm:$0xff] %v4806_v1 }
 0x540   :  { %v3490_v58 = vpop.f32.mrb[12].mxu0 }
 0x541   :  { %v4143_v59 = vadd.f32 %v3490_v58, %v2332_v23  ;;  %v3492_v60 = vpop.f32.mrb[13].mxu0 }
 0x542   :  { %v4144_v61 = vadd.f32 %v3492_v60, %v2336_v57  ;;  %v3494_v62 = vpop.f32.mrb[14].mxu0 }
 0x543   :  { %v4088_v63 = vmul.f32 -1.442695, %v4143_v59  ;;  %v3495_v0 = vpop.f32.mrb[15].mxu0 }
 0x544   :  { %v4089_v2 = vmul.f32 -1.442695, %v4144_v61 }
 0x545   :  { %4807 = vpow2.f32 %v4088_v63 }
 0x546   :  { %4809 = vpow2.f32 %v4089_v2 }
 0x54f   :  { %v4808_v3 = vpop.eup %4807 }
 0x550   :  { %v4810_v5 = vpop.eup %4809  ;;  %v3602_v6 = vadd.f32 1.0, %v4808_v3 }
 0x551   :  { %v3603_v41 = vadd.f32 1.0, %v4810_v5 }
 0x552   :  { %4811 = vrcp.f32 %v3602_v6 }
 0x553   :  { %4813 = vrcp.f32 %v3603_v41 }
 0x55c   :  { %v4812_v7 = vpop.eup %4811 }
 0x55d   :  { %v4814_v4 = vpop.eup %4813  ;;  %3623 = vst [vmem:[#allocation2 + $0x20] sm:$0xff] %v4812_v7 }
 0x55e   :  { %3624 = vst [vmem:[#allocation2 + $0x28] sm:$0xff] %v4814_v4 }
 0x55f   :  { %4848 = shalt.err (!%p4845_p12)
}
 0x560   :  { %s4849_s17 = scalar_lea.hbm %s6340_s10, 896 }
 0x561   :  { %p4850_p13 = scmp.ne.s32.totalorder %s6340_s10, %s4849_s17  ;;  %p4853_p0 = scmp.lt.u32.totalorder %s4849_s17, %s6340_s10 }
 0x563   :  { %p4855_p1 = pnand %p4853_p0, %p4850_p13 }
 0x565   :  { %4858 = shalt.err (!%p4855_p1)
}
 0x566   :  { %3636 = dma.vmem_to_hbm [thread:$0]  %s3634_s13, 896, %s6340_s10, [#allocation3]  }
 0x567   :  { %4859 = dma.done.wait [#allocation3], 896  }
 0x568   :  { %4860 = vsyncadd [#allocation3], 4294966400 }
 0x569   :  { %4861 = dma.done.wait [#allocation5], 128  }
 0x56a   :  { %4862 = vsyncadd [#allocation5], 4294967168 }
 0x56b   :  { %3653 = vsyncpa [#allocation3], 1 }
 0x56c   :  { %3654 = vsyncpa [#allocation5], 1 }

</bundles_post_ra>
